<compile_context>
chip_gen: v5e
topology: v5e:2x2
jax: 0.10.0
libtpu: 0.0.40
codegen_flags: <defaults>
</compile_context>

<pallas_src>
import math
from functools import partial

import jax
import jax.numpy as jnp
from jax import lax
from jax.experimental import pallas as pl
from jax.experimental.pallas import tpu as pltpu


# ----------------------------- shape schedule ------------------------------ #

def _round_up(n, m):
    return ((n + m - 1) // m) * m


def _time_schedule(T0, dilations, kernel_size):
    """Per-layer (T_in, T_out, pad) implied by pad = d*(2-1)//2, stride 1."""
    sched = []
    T = T0
    for d in dilations:
        p = (d * (2 - 1)) // 2            # exactly the PyTorch expression
        T_out = T + 2 * p - d * (kernel_size - 1)
        sched.append((T, T_out, p))
        T = T_out
    return sched


# ------------------------------ Pallas kernel ------------------------------ #

def _make_kernel(dilations, n_layers, kernel_size, schedule, Tpad, S, H):
    K = kernel_size
    block_end = 2 ** (n_layers - 1)

    def _sigmoid(v):
        return 1.0 / (1.0 + jnp.exp(-v))

    def _col_mask(n):
        lane = lax.broadcasted_iota(jnp.int32, (1, Tpad), 1)
        return (lane < n).astype(jnp.float32)

    def kernel(x_ref, cw_ref, wf_ref, w1t_ref, b1_ref, w2_ref, b2_ref, out_ref):
        # Invariant: `out` is (H, Tpad) f32 with zeros in columns >= T_valid.
        out = x_ref[0]                                    # valid in [0, T0)
        acc = None                                        # running skip sum
        T_acc = 0

        for i, d in enumerate(dilations):
            T_in, T_conv, p = schedule[i]
            layer_in = out
            w_i = cw_ref[i]                               # (H, K) f32

            # --- depthwise dilated conv: K XLU rolls + VPU multiply-adds ----
            conv = None
            for k in range(K):
                src = k * d - p                           # source offset
                tap = layer_in if src == 0 else pltpu.roll(
                    layer_in, shift=(-src) % Tpad, axis=1)
                term = w_i[:, k:k + 1] * tap
                conv = term if conv is None else conv + term
            mask_c = _col_mask(T_conv)
            conv = conv * mask_c                          # keep pad lanes zero

            # --- fused skip + residual 1x1 convs: one bf16 MXU matmul -------
            x2 = jnp.concatenate([conv, jnp.maximum(conv, 0.0)], axis=0)
            fused = jnp.dot(wf_ref[i], x2.astype(jnp.bfloat16),
                            preferred_element_type=jnp.float32)  # (S+H, Tpad)
            skip = fused[:S]                              # (S, Tpad)
            res = fused[S:]                               # (H, Tpad)

            # --- residual add with right-aligned crop of layer_in -----------
            c = T_in - T_conv
            li = layer_in if c == 0 else pltpu.roll(
                layer_in, shift=(-c) % Tpad, axis=1)
            out = (res + li) * mask_c

            # --- running, pre-cropped skip accumulator ----------------------
            if acc is None:
                acc = skip
            else:
                delta = T_acc - T_conv
                acc_s = acc if delta == 0 else pltpu.roll(
                    acc, shift=(-delta) % Tpad, axis=1)
                acc = acc_s + skip
            T_acc = T_conv

            # --- end of every dilation block: SE channel attention (VPU) ----
            if d == block_end:
                ssum = acc * mask_c                       # valid [0, T_conv)
                y = jnp.sum(ssum, axis=1, keepdims=True) * (1.0 / T_conv)  # (S,1)
                z = jnp.maximum(
                    jnp.sum(w1t_ref[...] * y, axis=0, keepdims=True)
                    + b1_ref[...], 0.0)                   # (1, se_hidden)
                att = _sigmoid(
                    jnp.sum(w2_ref[...] * z, axis=1, keepdims=True)
                    + b2_ref[...])                        # (S, 1)
                out = ssum * att
                acc = None
                T_acc = 0

        out_ref[0] = out                                  # lane-dense store

    return kernel


# ------------------------------- JAX wrapper -------------------------------- #

def audio_info_collect_forward(x, conv_w, skip_w, resi_w, w1, b1, w2, b2, *,
                               dilations, n_layers, kernel_size):
    B, H, T0 = x.shape
    L, S, _ = skip_w.shape
    assert S == H, "module forward requires skip_channels == hidden_channels"
    assert dilations[-1] == 2 ** (n_layers - 1), "last layer must end a block"
    schedule = _time_schedule(T0, dilations, kernel_size)
    T_final = schedule[-1][1]
    p_max = max(p for (_, _, p) in schedule)
    Tpad = _round_up(T0 + max(p_max, 1), 128)     # lane-aligned working width
    se_hidden = w1.shape[0]

    # Wrapper-side layout plumbing (cheap XLA ops): zero-pad time to a
    # multiple of 128 lanes so every kernel op / store is unmasked.
    x_pad = jnp.pad(x, ((0, 0), (0, 0), (0, Tpad - T0)))

    # Fused block-diagonal [skip; residual] 1x1 weight, cast to bf16 for MXU.
    wf = jnp.concatenate(
        [jnp.concatenate([skip_w, jnp.zeros((L, S, H), skip_w.dtype)], axis=2),
         jnp.concatenate([jnp.zeros((L, H, H), resi_w.dtype), resi_w], axis=2)],
        axis=1).astype(jnp.bfloat16)                        # (L, S+H, 2H)

    # SE weights reshaped so the kernel never needs an in-kernel transpose.
    w1t = jnp.transpose(w1)                                 # (S, se_hidden)
    b1r = jnp.reshape(b1, (1, se_hidden))                   # (1, se_hidden)

    # Advisory cost estimate so XLA can overlap surrounding HLO.
    flops = 0
    for (_, T_c, _) in schedule:
        flops += B * (2 * kernel_size * H * T_c + 2 * (S + H) * 2 * H * T_c)
    n_be = sum(1 for d in dilations if d == 2 ** (n_layers - 1))
    flops += B * n_be * (4 * S * se_hidden + 8 * S)
    transcendentals = B * n_be * S
    bytes_accessed = (4 * (B * H * Tpad + B * S * Tpad) + 4 * conv_w.size
                      + 2 * (L * (S + H) * 2 * H)
                      + 4 * (w1.size + b1.size + w2.size + b2.size))

    out_pad = pl.pallas_call(
        _make_kernel(tuple(dilations), n_layers, kernel_size, tuple(schedule),
                     Tpad, S, H),
        out_shape=jax.ShapeDtypeStruct((B, S, Tpad), jnp.float32),
        grid_spec=pltpu.PrefetchScalarGridSpec(
            num_scalar_prefetch=0,
            grid=(B,),
            in_specs=[
                pl.BlockSpec((1, H, Tpad), lambda b: (b, 0, 0)),
                pl.BlockSpec((L, H, kernel_size), lambda b: (0, 0, 0)),
                pl.BlockSpec((L, S + H, 2 * H), lambda b: (0, 0, 0)),
                pl.BlockSpec((S, se_hidden), lambda b: (0, 0)),
                pl.BlockSpec((1, se_hidden), lambda b: (0, 0)),
                pl.BlockSpec((S, se_hidden), lambda b: (0, 0)),
                pl.BlockSpec((S, 1), lambda b: (0, 0)),
            ],
            out_specs=pl.BlockSpec((1, S, Tpad), lambda b: (b, 0, 0)),
        ),
        compiler_params=pltpu.CompilerParams(
            dimension_semantics=("parallel",),
            vmem_limit_bytes=48 * 1024 * 1024),
        cost_estimate=pl.CostEstimate(flops=int(flops),
                                      transcendentals=int(transcendentals),
                                      bytes_accessed=int(bytes_accessed)),
    )(x_pad, conv_w, wf, w1t, b1r, w2, b2)

    return out_pad[:, :, :T_final]


# -------------------------------- reference --------------------------------- #

def reference_forward(x, conv_w, skip_w, resi_w, w1, b1, w2, b2, *,
                      dilations, n_layers, kernel_size):
    hp = lax.Precision.HIGHEST
    out = x
    skips = []
    for i, d in enumerate(dilations):
        layer_in = out
        p = (d * (2 - 1)) // 2
        c = lax.conv_general_dilated(
            out, conv_w[i][:, None, :], window_strides=(1,),
            padding=[(p, p)], rhs_dilation=(d,),
            dimension_numbers=("NCH", "OIH", "NCH"),
            feature_group_count=out.shape[1], precision=hp)
        skips.append(jnp.einsum("sh,bht->bst", skip_w[i], c, precision=hp))
        h = jnp.maximum(c, 0.0)
        h = jnp.einsum("oh,bht->bot", resi_w[i], h, precision=hp)
        Tc = h.shape[2]
        out = h + layer_in[:, :, layer_in.shape[2] - Tc:]
        if d == 2 ** (n_layers - 1):
            Tc = out.shape[2]
            ssum = skips[0][:, :, skips[0].shape[2] - Tc:]
            for s in skips[1:]:
                ssum = ssum + s[:, :, s.shape[2] - Tc:]
            y = jnp.mean(ssum, axis=2)                                  # (B, S)
            z = jnp.maximum(jnp.einsum("hs,bs->bh", w1, y, precision=hp)
                            + b1[:, 0][None, :], 0.0)
            att = 1.0 / (1.0 + jnp.exp(
                -(jnp.einsum("sh,bh->bs", w2, z, precision=hp)
                  + b2[:, 0][None, :])))
            out = ssum * att[:, :, None]
            skips = []
    return out


# ----------------------------------- main ------------------------------------ #

if __name__ == "__main__":
    # Small shapes consistent with the module's args.
    B = 2
    hidden_channels = 32      # args.hidden_channels
    skip_channels = 32        # args.skip_channels (== hidden so forward composes)
    T = 16                    # sequence length
    n_layers = 3              # args.n_layers
    n_blocks = 2              # args.n_blocks
    dilation = 2              # args.dilation
    kernel_size = 2           # args.kernel_size
    dilations = [dilation ** i for i in range(n_layers)] * n_blocks
    L = len(dilations)
    se_hidden = skip_channels // 4

    key = jax.random.PRNGKey(0)
    ks = jax.random.split(key, 6)
    x = jax.random.normal(ks[0], (B, hidden_channels, T), jnp.float32)
    conv_w = jax.random.normal(ks[1], (L, hidden_channels, kernel_size),
                               jnp.float32) * 0.5
    skip_w = jax.random.normal(ks[2], (L, skip_channels, hidden_channels),
                               jnp.float32) * (1.0 / math.sqrt(hidden_channels))
    resi_w = jax.random.normal(ks[3], (L, hidden_channels, hidden_channels),
                               jnp.float32) * (1.0 / math.sqrt(hidden_channels))
    w1 = jax.random.normal(ks[4], (se_hidden, skip_channels),
                           jnp.float32) * (1.0 / math.sqrt(skip_channels))
    b1 = jnp.zeros((se_hidden, 1), jnp.float32)
    w2 = jax.random.normal(ks[5], (skip_channels, se_hidden),
                           jnp.float32) * (1.0 / math.sqrt(se_hidden))
    b2 = jnp.zeros((skip_channels, 1), jnp.float32)

    fwd = jax.jit(partial(audio_info_collect_forward,
                          dilations=tuple(dilations), n_layers=n_layers,
                          kernel_size=kernel_size))
    out = jax.block_until_ready(fwd(x, conv_w, skip_w, resi_w, w1, b1, w2, b2))

    ref = reference_forward(x, conv_w, skip_w, resi_w, w1, b1, w2, b2,
                            dilations=dilations, n_layers=n_layers,
                            kernel_size=kernel_size)
    assert out.shape == ref.shape, (out.shape, ref.shape)
    max_err = float(jnp.max(jnp.abs(out - ref)))
    # bf16 MXU operands with f32 accumulation -> tolerance reflects bf16 rounding.
    assert jnp.allclose(out, ref, rtol=5e-2, atol=5e-2), max_err
    print("KERNEL_OK")
</pallas_src>

<mosaic_0001>
module attributes {stable_mosaic.version = 11 : i64} {
  func.func @kernel(%arg0: i32, %arg1: memref<1x32x128xf32, #tpu.memory_space<vmem>>, %arg2: memref<6x32x2xf32, #tpu.memory_space<vmem>>, %arg3: memref<6x64x64xbf16, #tpu.memory_space<vmem>>, %arg4: memref<32x8xf32, #tpu.memory_space<vmem>>, %arg5: memref<1x8xf32, #tpu.memory_space<vmem>>, %arg6: memref<32x8xf32, #tpu.memory_space<vmem>>, %arg7: memref<32x1xf32, #tpu.memory_space<vmem>>, %arg8: memref<1x32x128xf32, #tpu.memory_space<vmem>>) attributes {dimension_semantics = [#tpu.dimension_semantics<parallel>], iteration_bounds = array<i64: 2>, scalar_prefetch = 0 : i64, scratch_operands = 0 : i64, tpu.core_type = #tpu.core_type<tc>, window_params = [{transform_indices = @transform_0, window_bounds = array<i64: 1, 32, 128>}, {pipeline_mode = #tpu.pipeline_mode<synchronous>, transform_indices = @transform_1, window_bounds = array<i64: 6, 32, 2>}, {pipeline_mode = #tpu.pipeline_mode<synchronous>, transform_indices = @transform_2, window_bounds = array<i64: 6, 64, 64>}, {pipeline_mode = #tpu.pipeline_mode<synchronous>, transform_indices = @transform_3, window_bounds = array<i64: 32, 8>}, {pipeline_mode = #tpu.pipeline_mode<synchronous>, transform_indices = @transform_4, window_bounds = array<i64: 1, 8>}, {pipeline_mode = #tpu.pipeline_mode<synchronous>, transform_indices = @transform_5, window_bounds = array<i64: 32, 8>}, {pipeline_mode = #tpu.pipeline_mode<synchronous>, transform_indices = @transform_6, window_bounds = array<i64: 32, 1>}, {transform_indices = @transform_7, window_bounds = array<i64: 1, 32, 128>}]} {
    %c0 = arith.constant 0 : index
    %c0_0 = arith.constant 0 : index
    %c0_1 = arith.constant 0 : index
    %0 = vector.load %arg1[%c0, %c0_0, %c0_1] : memref<1x32x128xf32, #tpu.memory_space<vmem>>, vector<1x32x128xf32>
    %1 = vector.shape_cast %0 : vector<1x32x128xf32> to vector<32x128xf32>
    %c0_2 = arith.constant 0 : index
    %c0_3 = arith.constant 0 : index
    %c0_4 = arith.constant 0 : index
    %2 = vector.load %arg2[%c0_2, %c0_3, %c0_4] : memref<6x32x2xf32, #tpu.memory_space<vmem>>, vector<1x32x2xf32>
    %3 = vector.shape_cast %2 : vector<1x32x2xf32> to vector<32x2xf32>
    %4 = vector.extract_strided_slice %3 {offsets = [0, 0], sizes = [32, 1], strides = [1, 1]} : vector<32x2xf32> to vector<32x1xf32>
    %5 = vector.broadcast %4 : vector<32x1xf32> to vector<32x128xf32>
    %6 = arith.mulf %5, %1 : vector<32x128xf32>
    %c127_i32 = arith.constant 127 : i32
    %7 = tpu.dynamic_rotate %1 by %c127_i32 dim 1 : vector<32x128xf32>, i32 -> vector<32x128xf32>
    %8 = vector.extract_strided_slice %3 {offsets = [0, 1], sizes = [32, 1], strides = [1, 1]} : vector<32x2xf32> to vector<32x1xf32>
    %9 = vector.broadcast %8 : vector<32x1xf32> to vector<32x128xf32>
    %10 = arith.mulf %9, %7 : vector<32x128xf32>
    %11 = arith.addf %6, %10 : vector<32x128xf32>
    %12 = tpu.iota {dimensions = array<i32: 1>} : vector<1x128xi32>
    %c15_i32 = arith.constant 15 : i32
    %13 = vector.broadcast %c15_i32 : i32 to vector<1x128xi32>
    %14 = arith.cmpi slt, %12, %13 : vector<1x128xi32>
    %15 = arith.extui %14 : vector<1x128xi1> to vector<1x128xi32>
    %16 = arith.sitofp %15 : vector<1x128xi32> to vector<1x128xf32>
    %17 = vector.broadcast %16 : vector<1x128xf32> to vector<32x128xf32>
    %18 = arith.mulf %11, %17 : vector<32x128xf32>
    %cst = arith.constant 0.000000e+00 : f32
    %19 = vector.broadcast %cst : f32 to vector<32x128xf32>
    %20 = arith.maximumf %18, %19 : vector<32x128xf32>
    %21 = tpu.concatenate %18, %20 in 0 : vector<32x128xf32>, vector<32x128xf32> -> vector<64x128xf32>
    %c0_5 = arith.constant 0 : index
    %c0_6 = arith.constant 0 : index
    %c0_7 = arith.constant 0 : index
    %22 = vector.load %arg3[%c0_5, %c0_6, %c0_7] : memref<6x64x64xbf16, #tpu.memory_space<vmem>>, vector<1x64x64xbf16>
    %23 = vector.shape_cast %22 : vector<1x64x64xbf16> to vector<64x64xbf16>
    %24 = arith.truncf %21 : vector<64x128xf32> to vector<64x128xbf16>
    %cst_8 = arith.constant dense<0.000000e+00> : vector<64x128xf32>
    %25 = tpu.matmul %23, %24, %cst_8 {dimension_numbers = #tpu.dot_dimension_numbers<[1], [0], [0], [1], [0, 0, 1, 1], [], []>} : vector<64x64xbf16>, vector<64x128xbf16>, vector<64x128xf32> -> vector<64x128xf32>
    %26 = vector.extract_strided_slice %25 {offsets = [0, 0], sizes = [32, 128], strides = [1, 1]} : vector<64x128xf32> to vector<32x128xf32>
    %27 = vector.extract_strided_slice %25 {offsets = [32, 0], sizes = [32, 128], strides = [1, 1]} : vector<64x128xf32> to vector<32x128xf32>
    %c127_i32_9 = arith.constant 127 : i32
    %28 = tpu.dynamic_rotate %1 by %c127_i32_9 dim 1 : vector<32x128xf32>, i32 -> vector<32x128xf32>
    %29 = arith.addf %27, %28 : vector<32x128xf32>
    %30 = vector.broadcast %16 : vector<1x128xf32> to vector<32x128xf32>
    %31 = arith.mulf %29, %30 : vector<32x128xf32>
    %c1 = arith.constant 1 : index
    %c0_10 = arith.constant 0 : index
    %c0_11 = arith.constant 0 : index
    %32 = vector.load %arg2[%c1, %c0_10, %c0_11] : memref<6x32x2xf32, #tpu.memory_space<vmem>>, vector<1x32x2xf32>
    %33 = vector.shape_cast %32 : vector<1x32x2xf32> to vector<32x2xf32>
    %c1_i32 = arith.constant 1 : i32
    %34 = tpu.dynamic_rotate %31 by %c1_i32 dim 1 : vector<32x128xf32>, i32 -> vector<32x128xf32>
    %35 = vector.extract_strided_slice %33 {offsets = [0, 0], sizes = [32, 1], strides = [1, 1]} : vector<32x2xf32> to vector<32x1xf32>
    %36 = vector.broadcast %35 : vector<32x1xf32> to vector<32x128xf32>
    %37 = arith.mulf %36, %34 : vector<32x128xf32>
    %c127_i32_12 = arith.constant 127 : i32
    %38 = tpu.dynamic_rotate %31 by %c127_i32_12 dim 1 : vector<32x128xf32>, i32 -> vector<32x128xf32>
    %39 = vector.extract_strided_slice %33 {offsets = [0, 1], sizes = [32, 1], strides = [1, 1]} : vector<32x2xf32> to vector<32x1xf32>
    %40 = vector.broadcast %39 : vector<32x1xf32> to vector<32x128xf32>
    %41 = arith.mulf %40, %38 : vector<32x128xf32>
    %42 = arith.addf %37, %41 : vector<32x128xf32>
    %43 = tpu.iota {dimensions = array<i32: 1>} : vector<1x128xi32>
    %c15_i32_13 = arith.constant 15 : i32
    %44 = vector.broadcast %c15_i32_13 : i32 to vector<1x128xi32>
    %45 = arith.cmpi slt, %43, %44 : vector<1x128xi32>
    %46 = arith.extui %45 : vector<1x128xi1> to vector<1x128xi32>
    %47 = arith.sitofp %46 : vector<1x128xi32> to vector<1x128xf32>
    %48 = vector.broadcast %47 : vector<1x128xf32> to vector<32x128xf32>
    %49 = arith.mulf %42, %48 : vector<32x128xf32>
    %cst_14 = arith.constant 0.000000e+00 : f32
    %50 = vector.broadcast %cst_14 : f32 to vector<32x128xf32>
    %51 = arith.maximumf %49, %50 : vector<32x128xf32>
    %52 = tpu.concatenate %49, %51 in 0 : vector<32x128xf32>, vector<32x128xf32> -> vector<64x128xf32>
    %c1_15 = arith.constant 1 : index
    %c0_16 = arith.constant 0 : index
    %c0_17 = arith.constant 0 : index
    %53 = vector.load %arg3[%c1_15, %c0_16, %c0_17] : memref<6x64x64xbf16, #tpu.memory_space<vmem>>, vector<1x64x64xbf16>
    %54 = vector.shape_cast %53 : vector<1x64x64xbf16> to vector<64x64xbf16>
    %55 = arith.truncf %52 : vector<64x128xf32> to vector<64x128xbf16>
    %cst_18 = arith.constant dense<0.000000e+00> : vector<64x128xf32>
    %56 = tpu.matmul %54, %55, %cst_18 {dimension_numbers = #tpu.dot_dimension_numbers<[1], [0], [0], [1], [0, 0, 1, 1], [], []>} : vector<64x64xbf16>, vector<64x128xbf16>, vector<64x128xf32> -> vector<64x128xf32>
    %57 = vector.extract_strided_slice %56 {offsets = [0, 0], sizes = [32, 128], strides = [1, 1]} : vector<64x128xf32> to vector<32x128xf32>
    %58 = vector.extract_strided_slice %56 {offsets = [32, 0], sizes = [32, 128], strides = [1, 1]} : vector<64x128xf32> to vector<32x128xf32>
    %59 = arith.addf %58, %31 : vector<32x128xf32>
    %60 = vector.broadcast %47 : vector<1x128xf32> to vector<32x128xf32>
    %61 = arith.mulf %59, %60 : vector<32x128xf32>
    %62 = arith.addf %26, %57 : vector<32x128xf32>
    %c2 = arith.constant 2 : index
    %c0_19 = arith.constant 0 : index
    %c0_20 = arith.constant 0 : index
    %63 = vector.load %arg2[%c2, %c0_19, %c0_20] : memref<6x32x2xf32, #tpu.memory_space<vmem>>, vector<1x32x2xf32>
    %64 = vector.shape_cast %63 : vector<1x32x2xf32> to vector<32x2xf32>
    %c2_i32 = arith.constant 2 : i32
    %65 = tpu.dynamic_rotate %61 by %c2_i32 dim 1 : vector<32x128xf32>, i32 -> vector<32x128xf32>
    %66 = vector.extract_strided_slice %64 {offsets = [0, 0], sizes = [32, 1], strides = [1, 1]} : vector<32x2xf32> to vector<32x1xf32>
    %67 = vector.broadcast %66 : vector<32x1xf32> to vector<32x128xf32>
    %68 = arith.mulf %67, %65 : vector<32x128xf32>
    %c126_i32 = arith.constant 126 : i32
    %69 = tpu.dynamic_rotate %61 by %c126_i32 dim 1 : vector<32x128xf32>, i32 -> vector<32x128xf32>
    %70 = vector.extract_strided_slice %64 {offsets = [0, 1], sizes = [32, 1], strides = [1, 1]} : vector<32x2xf32> to vector<32x1xf32>
    %71 = vector.broadcast %70 : vector<32x1xf32> to vector<32x128xf32>
    %72 = arith.mulf %71, %69 : vector<32x128xf32>
    %73 = arith.addf %68, %72 : vector<32x128xf32>
    %74 = tpu.iota {dimensions = array<i32: 1>} : vector<1x128xi32>
    %c15_i32_21 = arith.constant 15 : i32
    %75 = vector.broadcast %c15_i32_21 : i32 to vector<1x128xi32>
    %76 = arith.cmpi slt, %74, %75 : vector<1x128xi32>
    %77 = arith.extui %76 : vector<1x128xi1> to vector<1x128xi32>
    %78 = arith.sitofp %77 : vector<1x128xi32> to vector<1x128xf32>
    %79 = vector.broadcast %78 : vector<1x128xf32> to vector<32x128xf32>
    %80 = arith.mulf %73, %79 : vector<32x128xf32>
    %cst_22 = arith.constant 0.000000e+00 : f32
    %81 = vector.broadcast %cst_22 : f32 to vector<32x128xf32>
    %82 = arith.maximumf %80, %81 : vector<32x128xf32>
    %83 = tpu.concatenate %80, %82 in 0 : vector<32x128xf32>, vector<32x128xf32> -> vector<64x128xf32>
    %c2_23 = arith.constant 2 : index
    %c0_24 = arith.constant 0 : index
    %c0_25 = arith.constant 0 : index
    %84 = vector.load %arg3[%c2_23, %c0_24, %c0_25] : memref<6x64x64xbf16, #tpu.memory_space<vmem>>, vector<1x64x64xbf16>
    %85 = vector.shape_cast %84 : vector<1x64x64xbf16> to vector<64x64xbf16>
    %86 = arith.truncf %83 : vector<64x128xf32> to vector<64x128xbf16>
    %cst_26 = arith.constant dense<0.000000e+00> : vector<64x128xf32>
    %87 = tpu.matmul %85, %86, %cst_26 {dimension_numbers = #tpu.dot_dimension_numbers<[1], [0], [0], [1], [0, 0, 1, 1], [], []>} : vector<64x64xbf16>, vector<64x128xbf16>, vector<64x128xf32> -> vector<64x128xf32>
    %88 = vector.extract_strided_slice %87 {offsets = [0, 0], sizes = [32, 128], strides = [1, 1]} : vector<64x128xf32> to vector<32x128xf32>
    %89 = arith.addf %62, %88 : vector<32x128xf32>
    %90 = vector.broadcast %78 : vector<1x128xf32> to vector<32x128xf32>
    %91 = arith.mulf %89, %90 : vector<32x128xf32>
    %cst_27 = arith.constant dense<0.000000e+00> : vector<32xf32>
    %92 = vector.multi_reduction <add>, %91, %cst_27 [1] : vector<32x128xf32> to vector<32xf32>
    %93 = vector.shape_cast %92 : vector<32xf32> to vector<32x1xf32>
    %cst_28 = arith.constant 0.0666666701 : f32
    %94 = vector.broadcast %cst_28 : f32 to vector<32x1xf32>
    %95 = arith.mulf %93, %94 : vector<32x1xf32>
    %c0_29 = arith.constant 0 : index
    %c0_30 = arith.constant 0 : index
    %96 = vector.load %arg4[%c0_29, %c0_30] : memref<32x8xf32, #tpu.memory_space<vmem>>, vector<32x8xf32>
    %97 = vector.broadcast %95 : vector<32x1xf32> to vector<32x8xf32>
    %98 = arith.mulf %96, %97 : vector<32x8xf32>
    %cst_31 = arith.constant dense<0.000000e+00> : vector<8xf32>
    %99 = vector.multi_reduction <add>, %98, %cst_31 [0] : vector<32x8xf32> to vector<8xf32>
    %100 = vector.shape_cast %99 : vector<8xf32> to vector<1x8xf32>
    %c0_32 = arith.constant 0 : index
    %c0_33 = arith.constant 0 : index
    %101 = vector.load %arg5[%c0_32, %c0_33] : memref<1x8xf32, #tpu.memory_space<vmem>>, vector<1x8xf32>
    %102 = arith.addf %100, %101 : vector<1x8xf32>
    %cst_34 = arith.constant 0.000000e+00 : f32
    %103 = vector.broadcast %cst_34 : f32 to vector<1x8xf32>
    %104 = arith.maximumf %102, %103 : vector<1x8xf32>
    %c0_35 = arith.constant 0 : index
    %c0_36 = arith.constant 0 : index
    %105 = vector.load %arg6[%c0_35, %c0_36] : memref<32x8xf32, #tpu.memory_space<vmem>>, vector<32x8xf32>
    %106 = vector.broadcast %104 : vector<1x8xf32> to vector<32x8xf32>
    %107 = arith.mulf %105, %106 : vector<32x8xf32>
    %cst_37 = arith.constant dense<0.000000e+00> : vector<32xf32>
    %108 = vector.multi_reduction <add>, %107, %cst_37 [1] : vector<32x8xf32> to vector<32xf32>
    %109 = vector.shape_cast %108 : vector<32xf32> to vector<32x1xf32>
    %c0_38 = arith.constant 0 : index
    %c0_39 = arith.constant 0 : index
    %110 = vector.load %arg7[%c0_38, %c0_39] : memref<32x1xf32, #tpu.memory_space<vmem>>, vector<32x1xf32>
    %111 = arith.addf %109, %110 : vector<32x1xf32>
    %cst_40 = arith.constant 0.000000e+00 : f32
    %112 = vector.broadcast %cst_40 : f32 to vector<32x1xf32>
    %113 = arith.subf %112, %111 : vector<32x1xf32>
    %114 = math.exp %113 : vector<32x1xf32>
    %cst_41 = arith.constant 1.000000e+00 : f32
    %115 = vector.broadcast %cst_41 : f32 to vector<32x1xf32>
    %116 = arith.addf %115, %114 : vector<32x1xf32>
    %cst_42 = arith.constant 1.000000e+00 : f32
    %117 = vector.broadcast %cst_42 : f32 to vector<32x1xf32>
    %118 = arith.divf %117, %116 : vector<32x1xf32>
    %119 = vector.broadcast %118 : vector<32x1xf32> to vector<32x128xf32>
    %120 = arith.mulf %91, %119 : vector<32x128xf32>
    %c3 = arith.constant 3 : index
    %c0_43 = arith.constant 0 : index
    %c0_44 = arith.constant 0 : index
    %121 = vector.load %arg2[%c3, %c0_43, %c0_44] : memref<6x32x2xf32, #tpu.memory_space<vmem>>, vector<1x32x2xf32>
    %122 = vector.shape_cast %121 : vector<1x32x2xf32> to vector<32x2xf32>
    %123 = vector.extract_strided_slice %122 {offsets = [0, 0], sizes = [32, 1], strides = [1, 1]} : vector<32x2xf32> to vector<32x1xf32>
    %124 = vector.broadcast %123 : vector<32x1xf32> to vector<32x128xf32>
    %125 = arith.mulf %124, %120 : vector<32x128xf32>
    %c127_i32_45 = arith.constant 127 : i32
    %126 = tpu.dynamic_rotate %120 by %c127_i32_45 dim 1 : vector<32x128xf32>, i32 -> vector<32x128xf32>
    %127 = vector.extract_strided_slice %122 {offsets = [0, 1], sizes = [32, 1], strides = [1, 1]} : vector<32x2xf32> to vector<32x1xf32>
    %128 = vector.broadcast %127 : vector<32x1xf32> to vector<32x128xf32>
    %129 = arith.mulf %128, %126 : vector<32x128xf32>
    %130 = arith.addf %125, %129 : vector<32x128xf32>
    %131 = tpu.iota {dimensions = array<i32: 1>} : vector<1x128xi32>
    %c14_i32 = arith.constant 14 : i32
    %132 = vector.broadcast %c14_i32 : i32 to vector<1x128xi32>
    %133 = arith.cmpi slt, %131, %132 : vector<1x128xi32>
    %134 = arith.extui %133 : vector<1x128xi1> to vector<1x128xi32>
    %135 = arith.sitofp %134 : vector<1x128xi32> to vector<1x128xf32>
    %136 = vector.broadcast %135 : vector<1x128xf32> to vector<32x128xf32>
    %137 = arith.mulf %130, %136 : vector<32x128xf32>
    %cst_46 = arith.constant 0.000000e+00 : f32
    %138 = vector.broadcast %cst_46 : f32 to vector<32x128xf32>
    %139 = arith.maximumf %137, %138 : vector<32x128xf32>
    %140 = tpu.concatenate %137, %139 in 0 : vector<32x128xf32>, vector<32x128xf32> -> vector<64x128xf32>
    %c3_47 = arith.constant 3 : index
    %c0_48 = arith.constant 0 : index
    %c0_49 = arith.constant 0 : index
    %141 = vector.load %arg3[%c3_47, %c0_48, %c0_49] : memref<6x64x64xbf16, #tpu.memory_space<vmem>>, vector<1x64x64xbf16>
    %142 = vector.shape_cast %141 : vector<1x64x64xbf16> to vector<64x64xbf16>
    %143 = arith.truncf %140 : vector<64x128xf32> to vector<64x128xbf16>
    %cst_50 = arith.constant dense<0.000000e+00> : vector<64x128xf32>
    %144 = tpu.matmul %142, %143, %cst_50 {dimension_numbers = #tpu.dot_dimension_numbers<[1], [0], [0], [1], [0, 0, 1, 1], [], []>} : vector<64x64xbf16>, vector<64x128xbf16>, vector<64x128xf32> -> vector<64x128xf32>
    %145 = vector.extract_strided_slice %144 {offsets = [0, 0], sizes = [32, 128], strides = [1, 1]} : vector<64x128xf32> to vector<32x128xf32>
    %146 = vector.extract_strided_slice %144 {offsets = [32, 0], sizes = [32, 128], strides = [1, 1]} : vector<64x128xf32> to vector<32x128xf32>
    %c127_i32_51 = arith.constant 127 : i32
    %147 = tpu.dynamic_rotate %120 by %c127_i32_51 dim 1 : vector<32x128xf32>, i32 -> vector<32x128xf32>
    %148 = arith.addf %146, %147 : vector<32x128xf32>
    %149 = vector.broadcast %135 : vector<1x128xf32> to vector<32x128xf32>
    %150 = arith.mulf %148, %149 : vector<32x128xf32>
    %c4 = arith.constant 4 : index
    %c0_52 = arith.constant 0 : index
    %c0_53 = arith.constant 0 : index
    %151 = vector.load %arg2[%c4, %c0_52, %c0_53] : memref<6x32x2xf32, #tpu.memory_space<vmem>>, vector<1x32x2xf32>
    %152 = vector.shape_cast %151 : vector<1x32x2xf32> to vector<32x2xf32>
    %c1_i32_54 = arith.constant 1 : i32
    %153 = tpu.dynamic_rotate %150 by %c1_i32_54 dim 1 : vector<32x128xf32>, i32 -> vector<32x128xf32>
    %154 = vector.extract_strided_slice %152 {offsets = [0, 0], sizes = [32, 1], strides = [1, 1]} : vector<32x2xf32> to vector<32x1xf32>
    %155 = vector.broadcast %154 : vector<32x1xf32> to vector<32x128xf32>
    %156 = arith.mulf %155, %153 : vector<32x128xf32>
    %c127_i32_55 = arith.constant 127 : i32
    %157 = tpu.dynamic_rotate %150 by %c127_i32_55 dim 1 : vector<32x128xf32>, i32 -> vector<32x128xf32>
    %158 = vector.extract_strided_slice %152 {offsets = [0, 1], sizes = [32, 1], strides = [1, 1]} : vector<32x2xf32> to vector<32x1xf32>
    %159 = vector.broadcast %158 : vector<32x1xf32> to vector<32x128xf32>
    %160 = arith.mulf %159, %157 : vector<32x128xf32>
    %161 = arith.addf %156, %160 : vector<32x128xf32>
    %162 = tpu.iota {dimensions = array<i32: 1>} : vector<1x128xi32>
    %c14_i32_56 = arith.constant 14 : i32
    %163 = vector.broadcast %c14_i32_56 : i32 to vector<1x128xi32>
    %164 = arith.cmpi slt, %162, %163 : vector<1x128xi32>
    %165 = arith.extui %164 : vector<1x128xi1> to vector<1x128xi32>
    %166 = arith.sitofp %165 : vector<1x128xi32> to vector<1x128xf32>
    %167 = vector.broadcast %166 : vector<1x128xf32> to vector<32x128xf32>
    %168 = arith.mulf %161, %167 : vector<32x128xf32>
    %cst_57 = arith.constant 0.000000e+00 : f32
    %169 = vector.broadcast %cst_57 : f32 to vector<32x128xf32>
    %170 = arith.maximumf %168, %169 : vector<32x128xf32>
    %171 = tpu.concatenate %168, %170 in 0 : vector<32x128xf32>, vector<32x128xf32> -> vector<64x128xf32>
    %c4_58 = arith.constant 4 : index
    %c0_59 = arith.constant 0 : index
    %c0_60 = arith.constant 0 : index
    %172 = vector.load %arg3[%c4_58, %c0_59, %c0_60] : memref<6x64x64xbf16, #tpu.memory_space<vmem>>, vector<1x64x64xbf16>
    %173 = vector.shape_cast %172 : vector<1x64x64xbf16> to vector<64x64xbf16>
    %174 = arith.truncf %171 : vector<64x128xf32> to vector<64x128xbf16>
    %cst_61 = arith.constant dense<0.000000e+00> : vector<64x128xf32>
    %175 = tpu.matmul %173, %174, %cst_61 {dimension_numbers = #tpu.dot_dimension_numbers<[1], [0], [0], [1], [0, 0, 1, 1], [], []>} : vector<64x64xbf16>, vector<64x128xbf16>, vector<64x128xf32> -> vector<64x128xf32>
    %176 = vector.extract_strided_slice %175 {offsets = [0, 0], sizes = [32, 128], strides = [1, 1]} : vector<64x128xf32> to vector<32x128xf32>
    %177 = vector.extract_strided_slice %175 {offsets = [32, 0], sizes = [32, 128], strides = [1, 1]} : vector<64x128xf32> to vector<32x128xf32>
    %178 = arith.addf %177, %150 : vector<32x128xf32>
    %179 = vector.broadcast %166 : vector<1x128xf32> to vector<32x128xf32>
    %180 = arith.mulf %178, %179 : vector<32x128xf32>
    %181 = arith.addf %145, %176 : vector<32x128xf32>
    %c5 = arith.constant 5 : index
    %c0_62 = arith.constant 0 : index
    %c0_63 = arith.constant 0 : index
    %182 = vector.load %arg2[%c5, %c0_62, %c0_63] : memref<6x32x2xf32, #tpu.memory_space<vmem>>, vector<1x32x2xf32>
    %183 = vector.shape_cast %182 : vector<1x32x2xf32> to vector<32x2xf32>
    %c2_i32_64 = arith.constant 2 : i32
    %184 = tpu.dynamic_rotate %180 by %c2_i32_64 dim 1 : vector<32x128xf32>, i32 -> vector<32x128xf32>
    %185 = vector.extract_strided_slice %183 {offsets = [0, 0], sizes = [32, 1], strides = [1, 1]} : vector<32x2xf32> to vector<32x1xf32>
    %186 = vector.broadcast %185 : vector<32x1xf32> to vector<32x128xf32>
    %187 = arith.mulf %186, %184 : vector<32x128xf32>
    %c126_i32_65 = arith.constant 126 : i32
    %188 = tpu.dynamic_rotate %180 by %c126_i32_65 dim 1 : vector<32x128xf32>, i32 -> vector<32x128xf32>
    %189 = vector.extract_strided_slice %183 {offsets = [0, 1], sizes = [32, 1], strides = [1, 1]} : vector<32x2xf32> to vector<32x1xf32>
    %190 = vector.broadcast %189 : vector<32x1xf32> to vector<32x128xf32>
    %191 = arith.mulf %190, %188 : vector<32x128xf32>
    %192 = arith.addf %187, %191 : vector<32x128xf32>
    %193 = tpu.iota {dimensions = array<i32: 1>} : vector<1x128xi32>
    %c14_i32_66 = arith.constant 14 : i32
    %194 = vector.broadcast %c14_i32_66 : i32 to vector<1x128xi32>
    %195 = arith.cmpi slt, %193, %194 : vector<1x128xi32>
    %196 = arith.extui %195 : vector<1x128xi1> to vector<1x128xi32>
    %197 = arith.sitofp %196 : vector<1x128xi32> to vector<1x128xf32>
    %198 = vector.broadcast %197 : vector<1x128xf32> to vector<32x128xf32>
    %199 = arith.mulf %192, %198 : vector<32x128xf32>
    %cst_67 = arith.constant 0.000000e+00 : f32
    %200 = vector.broadcast %cst_67 : f32 to vector<32x128xf32>
    %201 = arith.maximumf %199, %200 : vector<32x128xf32>
    %202 = tpu.concatenate %199, %201 in 0 : vector<32x128xf32>, vector<32x128xf32> -> vector<64x128xf32>
    %c5_68 = arith.constant 5 : index
    %c0_69 = arith.constant 0 : index
    %c0_70 = arith.constant 0 : index
    %203 = vector.load %arg3[%c5_68, %c0_69, %c0_70] : memref<6x64x64xbf16, #tpu.memory_space<vmem>>, vector<1x64x64xbf16>
    %204 = vector.shape_cast %203 : vector<1x64x64xbf16> to vector<64x64xbf16>
    %205 = arith.truncf %202 : vector<64x128xf32> to vector<64x128xbf16>
    %cst_71 = arith.constant dense<0.000000e+00> : vector<64x128xf32>
    %206 = tpu.matmul %204, %205, %cst_71 {dimension_numbers = #tpu.dot_dimension_numbers<[1], [0], [0], [1], [0, 0, 1, 1], [], []>} : vector<64x64xbf16>, vector<64x128xbf16>, vector<64x128xf32> -> vector<64x128xf32>
    %207 = vector.extract_strided_slice %206 {offsets = [0, 0], sizes = [32, 128], strides = [1, 1]} : vector<64x128xf32> to vector<32x128xf32>
    %208 = arith.addf %181, %207 : vector<32x128xf32>
    %209 = vector.broadcast %197 : vector<1x128xf32> to vector<32x128xf32>
    %210 = arith.mulf %208, %209 : vector<32x128xf32>
    %cst_72 = arith.constant dense<0.000000e+00> : vector<32xf32>
    %211 = vector.multi_reduction <add>, %210, %cst_72 [1] : vector<32x128xf32> to vector<32xf32>
    %212 = vector.shape_cast %211 : vector<32xf32> to vector<32x1xf32>
    %cst_73 = arith.constant 0.0714285746 : f32
    %213 = vector.broadcast %cst_73 : f32 to vector<32x1xf32>
    %214 = arith.mulf %212, %213 : vector<32x1xf32>
    %c0_74 = arith.constant 0 : index
    %c0_75 = arith.constant 0 : index
    %215 = vector.load %arg4[%c0_74, %c0_75] : memref<32x8xf32, #tpu.memory_space<vmem>>, vector<32x8xf32>
    %216 = vector.broadcast %214 : vector<32x1xf32> to vector<32x8xf32>
    %217 = arith.mulf %215, %216 : vector<32x8xf32>
    %cst_76 = arith.constant dense<0.000000e+00> : vector<8xf32>
    %218 = vector.multi_reduction <add>, %217, %cst_76 [0] : vector<32x8xf32> to vector<8xf32>
    %219 = vector.shape_cast %218 : vector<8xf32> to vector<1x8xf32>
    %c0_77 = arith.constant 0 : index
    %c0_78 = arith.constant 0 : index
    %220 = vector.load %arg5[%c0_77, %c0_78] : memref<1x8xf32, #tpu.memory_space<vmem>>, vector<1x8xf32>
    %221 = arith.addf %219, %220 : vector<1x8xf32>
    %cst_79 = arith.constant 0.000000e+00 : f32
    %222 = vector.broadcast %cst_79 : f32 to vector<1x8xf32>
    %223 = arith.maximumf %221, %222 : vector<1x8xf32>
    %c0_80 = arith.constant 0 : index
    %c0_81 = arith.constant 0 : index
    %224 = vector.load %arg6[%c0_80, %c0_81] : memref<32x8xf32, #tpu.memory_space<vmem>>, vector<32x8xf32>
    %225 = vector.broadcast %223 : vector<1x8xf32> to vector<32x8xf32>
    %226 = arith.mulf %224, %225 : vector<32x8xf32>
    %cst_82 = arith.constant dense<0.000000e+00> : vector<32xf32>
    %227 = vector.multi_reduction <add>, %226, %cst_82 [1] : vector<32x8xf32> to vector<32xf32>
    %228 = vector.shape_cast %227 : vector<32xf32> to vector<32x1xf32>
    %c0_83 = arith.constant 0 : index
    %c0_84 = arith.constant 0 : index
    %229 = vector.load %arg7[%c0_83, %c0_84] : memref<32x1xf32, #tpu.memory_space<vmem>>, vector<32x1xf32>
    %230 = arith.addf %228, %229 : vector<32x1xf32>
    %cst_85 = arith.constant 0.000000e+00 : f32
    %231 = vector.broadcast %cst_85 : f32 to vector<32x1xf32>
    %232 = arith.subf %231, %230 : vector<32x1xf32>
    %233 = math.exp %232 : vector<32x1xf32>
    %cst_86 = arith.constant 1.000000e+00 : f32
    %234 = vector.broadcast %cst_86 : f32 to vector<32x1xf32>
    %235 = arith.addf %234, %233 : vector<32x1xf32>
    %cst_87 = arith.constant 1.000000e+00 : f32
    %236 = vector.broadcast %cst_87 : f32 to vector<32x1xf32>
    %237 = arith.divf %236, %235 : vector<32x1xf32>
    %238 = vector.broadcast %237 : vector<32x1xf32> to vector<32x128xf32>
    %239 = arith.mulf %210, %238 : vector<32x128xf32>
    %c0_88 = arith.constant 0 : index
    %c0_89 = arith.constant 0 : index
    %c0_90 = arith.constant 0 : index
    %240 = vector.load %arg8[%c0_88, %c0_89, %c0_90] : memref<1x32x128xf32, #tpu.memory_space<vmem>>, vector<1x32x128xf32>
    %241 = vector.shape_cast %240 : vector<1x32x128xf32> to vector<32x128xf32>
    %242 = vector.shape_cast %239 : vector<32x128xf32> to vector<1x32x128xf32>
    tpu.vector_store %arg8[%c0_88, %c0_89, %c0_90], %242 {strides = array<i32>} : memref<1x32x128xf32, #tpu.memory_space<vmem>>, vector<1x32x128xf32>,
    return
  }
  func.func @transform_0(%arg0: i32) -> (i32, i32, i32) {
    %c0_i32 = arith.constant 0 : i32
    %c0_i32_0 = arith.constant 0 : i32
    %c0_i32_1 = arith.constant 0 : i32
    return %arg0, %c0_i32, %c0_i32_0 : i32, i32, i32
  }
  func.func @transform_1(%arg0: i32) -> (i32, i32, i32) {
    %c0_i32 = arith.constant 0 : i32
    %c0_i32_0 = arith.constant 0 : i32
    %c0_i32_1 = arith.constant 0 : i32
    %c0_i32_2 = arith.constant 0 : i32
    return %c0_i32, %c0_i32_0, %c0_i32_1 : i32, i32, i32
  }
  func.func @transform_2(%arg0: i32) -> (i32, i32, i32) {
    %c0_i32 = arith.constant 0 : i32
    %c0_i32_0 = arith.constant 0 : i32
    %c0_i32_1 = arith.constant 0 : i32
    %c0_i32_2 = arith.constant 0 : i32
    return %c0_i32, %c0_i32_0, %c0_i32_1 : i32, i32, i32
  }
  func.func @transform_3(%arg0: i32) -> (i32, i32) {
    %c0_i32 = arith.constant 0 : i32
    %c0_i32_0 = arith.constant 0 : i32
    %c0_i32_1 = arith.constant 0 : i32
    return %c0_i32, %c0_i32_0 : i32, i32
  }
  func.func @transform_4(%arg0: i32) -> (i32, i32) {
    %c0_i32 = arith.constant 0 : i32
    %c0_i32_0 = arith.constant 0 : i32
    %c0_i32_1 = arith.constant 0 : i32
    return %c0_i32, %c0_i32_0 : i32, i32
  }
  func.func @transform_5(%arg0: i32) -> (i32, i32) {
    %c0_i32 = arith.constant 0 : i32
    %c0_i32_0 = arith.constant 0 : i32
    %c0_i32_1 = arith.constant 0 : i32
    return %c0_i32, %c0_i32_0 : i32, i32
  }
  func.func @transform_6(%arg0: i32) -> (i32, i32) {
    %c0_i32 = arith.constant 0 : i32
    %c0_i32_0 = arith.constant 0 : i32
    %c0_i32_1 = arith.constant 0 : i32
    return %c0_i32, %c0_i32_0 : i32, i32
  }
  func.func @transform_7(%arg0: i32) -> (i32, i32, i32) {
    %c0_i32 = arith.constant 0 : i32
    %c0_i32_0 = arith.constant 0 : i32
    %c0_i32_1 = arith.constant 0 : i32
    return %arg0, %c0_i32, %c0_i32_0 : i32, i32, i32
  }
}

</mosaic_0001>

<bundles_post_ra>
// kernel: audio_info_collect_forward.1
= control target key start
LH: loop header
LB: loop body
LE: loop exit
PB: predicated region body
PF: predicated region fallthrough
CT: control target
= control target key end

     0   :  { %s1963_s24 = smov 0   ;;  %s2505_s0 = inlined_call_operand.vmem [shape: f32[2,32,128], index: 0, kind: input, shape index: {}]   ;;  %s2506_s1 = inlined_call_operand.vmem [shape: f32[6,32,2], index: 1, kind: input, shape index: {}]   ;;  %s2507_s2 = inlined_call_operand.vmem [shape: bf16[6,64,64], index: 2, kind: input, shape index: {}]   ;;  %s2508_s3 = inlined_call_operand.vmem [shape: f32[32,8], index: 3, kind: input, shape index: {}]   ;;  %s2509_s4 = inlined_call_operand.vmem [shape: f32[1,8], index: 4, kind: input, shape index: {}]   ;;  %s2510_s5 = inlined_call_operand.vmem [shape: f32[32,8], index: 5, kind: input, shape index: {}]   ;;  %s2511_s6 = inlined_call_operand.vmem [shape: f32[32,1], index: 6, kind: input, shape index: {}]   ;;  %s2512_s7 = inlined_call_operand.vmem [shape: f32[2,32,128], index: 7, kind: output, shape index: {}]  }
   0x1 LB: > { %s1606_s25 = sadd.s32 4294967295, %s1914_s24   ;;  %p1610_p0 = scmp.ge.s32.totalorder %s1914_s24, 1  ;;  %s1914_s24 = sphi %s1963_s24, %s17_s24  }
   0x2   : > { %p237_p1 = scmp.lt.s32.totalorder %s1914_s24, 3 }
   0x4   : > { %p238_p2 = pnand %p1610_p0, %p237_p1 }
   0x5   : > { %p269_p3 = scmp.lt.s32.totalorder (!%p238_p2), %s1606_s25, 1  ;;  %s1918_s9 = smov (!%p238_p2), 127  }
   0x6   : > { %241 = sbr.rel (%p238_p2) target bundleno = 2766 (0xace), region = 48  ;;  %s1920_s29 = smov (!%p238_p2), 1  }
   0x7   : > { %s1921_s20 = smov (!%p238_p2), 2   ;;  %s1922_s21 = smov (!%p238_p2), 126  }
   0xb   : > { %v286_v0 = vld [vmem:[%s2506_s1 + $0x10] sm:$0xff]  ;;  %v1916_v1 = vmov 0   ;;  %v1917_v2 = vmov 1   ;;  %s2514_s25 = smov (!%p269_p3, %s1606_s25), 1  ;;  %v287_v4 = vld [vmem:[%s2506_s1 + $0x18] sm:$0xff]  ;;  %v284_v6 = vld [vmem:[%s2506_s1] sm:$0xff]  ;;  %v344_v13 = vlaneseq }
   0xc   : > { %1848 = vset.pattern.permute.xlu0 %v1916_v1  ;;  %1849 = vset.pattern.permute.xlu2 %v1917_v2  ;;  %s1799_s28 = sshll.u32 %s2514_s25, 5  ;;  %v285_v8 = vld [vmem:[%s2506_s1 + $0x8] sm:$0xff]  ;;  %v1639_v10 = vld [vmem:[%s2506_s1 + $0x38] sm:$0xff]  ;;  %v1919_v22 = vmov 0.0   ;;  %v1638_v46 = vld [vmem:[%s2506_s1 + $0x30] sm:$0xff]  ;;  %vm389_vm1 = vcmask 523264  }
   0xd   : > { %300 = vperm.xlu0 %1848, %v286_v0   ;;  %329 = vperm.xlu2 %1849, %v286_v0   ;;  %s273_s8 = scalar_lea.vmem %s2505_s0, %s1799_s28  ;;  %v2006_v16 = vand.u32 127, %v344_v13  ;;  %v1636_v51 = vld [vmem:[%s2506_s1 + $0x20] sm:$0xff]  ;;  %v1803_v53 = vld [vmem:[%s2507_s2 + $0x10] sm:$0xff]  ;;  %v1804_v54 = vld [vmem:[%s2507_s2 + $0x18] sm:$0xff]  ;;  %vm777_vm2 = vcmask 64512   ;;  %s278_s12 = scalar_lea.vmem %s2512_s7, %s1799_s28 }
   0xe   : > { %1850 = vset.pattern.permute.xlu1 %v1916_v1  ;;  %v282_v3 = vld [vmem:[%s273_s8 + $0x10] sm:$0xff]  ;;  %v283_v5 = vld [vmem:[%s273_s8 + $0x18] sm:$0xff]  ;;  %v280_v7 = vld [vmem:[%s273_s8] sm:$0xff] }
   0xf   : > { %316 = vrot.lane.b32.xlu1 %v282_v3, %s1918_s9  ;;  %v281_v9 = vld [vmem:[%s273_s8 + $0x8] sm:$0xff]  ;;  %vm346_vm0 = vcmp.lt.s32.totalorder %v2006_v16, 15 }
  0x10   : > { %v2013_v23 = vsel %vm346_vm0, 1.0, %v1919_v22 }
  0x15   : > { %305 = vperm.xlu0 %1848, %v287_v4   ;;  %333 = vperm.xlu2 %1849, %v287_v4   ;;  %v1637_v4 = vld [vmem:[%s2506_s1 + $0x28] sm:$0xff] }
  0x17   : > { %318 = vrot.lane.b32.xlu1 %v283_v5, %s1918_s9 }
  0x1d   : > { %290 = vperm.xlu0 %1848, %v284_v6   ;;  %312 = vrot.lane.b32.xlu2 %v280_v7, %s1918_s9 }
  0x1f   : > { %295 = vperm.xlu1 %1850, %v285_v8  }
  0x25   : > { %314 = vrot.lane.b32.xlu0 %v281_v9, %s1918_s9  ;;  %325 = vperm.xlu2 %1849, %v285_v8  }
  0x26   : > { %1853 = vset.pattern.permute.xlu0 %v1917_v2 }
  0x27   : > { %1851 = vset.pattern.permute.xlu1 %v1917_v2 }
  0x28   : > { %321 = vperm.xlu1 %1851, %v284_v6   ;;  %v1671_v6 = vld [vmem:[%s2506_s1 + $0x58] sm:$0xff] }
  0x2d   : > { %1852 = vset.pattern.permute.xlu2 %v1916_v1  ;;  %493 = vperm.xlu0 %1853, %v1638_v46  }
  0x2e   : > { %464 = vperm.xlu2 %1852, %v1638_v46  }
  0x30   : > { %497 = vperm.xlu1 %1851, %v1639_v10  }
  0x35   : > { %1854 = vset.pattern.permute.xlu0 %v1916_v1 }
  0x36   : > { %454 = vperm.xlu2 %1852, %v1636_v51   ;;  %469 = vperm.xlu0 %1854, %v1639_v10  }
  0x3e   : > { %1855 = vset.pattern.permute.xlu2 %v1917_v2 }
  0x67   : > { %v330_v11 = vpop.permute.xlu2 %329 }
  0x6f   : > { %v334_v14 = vpop.permute.xlu2 %333 }
  0x77   : > { %v313_v24 = vpop.permute.xlu2 %312 }
  0x7f   : > { %v301_v12 = vpop.permute.xlu0 %300  ;;  %v326_v35 = vpop.permute.xlu2 %325 }
  0x80   : > { %v310_v17 = vmul.f32 %v301_v12, %v282_v3 }
  0x81   : > { %v2004_v15 = vpop.permute.xlu1 %316 }
  0x82   : > { %v338_v18 = vmul.f32 %v330_v11, %v2004_v15 }
  0x84   : > { %v342_v20 = vadd.f32 %v338_v18, %v310_v17 }
  0x86   : > { %v351_v29 = vmul.f32 %v2013_v23, %v342_v20 }
  0x87   : > { %v306_v19 = vpop.permute.xlu0 %305 }
  0x88   : > { %v311_v25 = vmul.f32 %v306_v19, %v283_v5  ;;  %v355_v31 = vmax.f32 %v351_v29, 0.0 }
  0x89   : > { %v2010_v21 = vpop.permute.xlu1 %318 }
  0x8a   : > { %v339_v26 = vmul.f32 %v334_v14, %v2010_v21 }
  0x8c   : > { %v343_v27 = vadd.f32 %v339_v26, %v311_v25 }
  0x8e   : > { %v352_v30 = vmul.f32 %v2013_v23, %v343_v27 }
  0x8f   : > { %v291_v28 = vpop.permute.xlu0 %290 }
  0x90   : > { %v356_v32 = vmax.f32 %v352_v30, 0.0  ;;  %v308_v41 = vmul.f32 %v291_v28, %v280_v7  ;;  %v366_v50 = vpack.c.bf16 %v352_v30, %v351_v29  ;;  %v465_v7 = vpop.permute.xlu2 %464 }
  0x91   : > { %v296_v33 = vpop.permute.xlu1 %295 }
  0x92   : > { %v368_v34 = vpack.c.bf16 %v356_v32, %v355_v31  ;;  %v309_v38 = vmul.f32 %v296_v33, %v281_v9 }
  0x94   : > { %406 = vmatpush.bf16.msra.mxu0 %v368_v34  ;;  %1825 = vmatpush.bf16.msra.mxu2 %v368_v34 }
  0x97   : > { %v315_v36 = vpop.permute.xlu0 %314 }
  0x98   : > { %v337_v37 = vmul.f32 %v326_v35, %v315_v36  ;;  %v455_v8 = vpop.permute.xlu2 %454 }
  0x9a   : > { %v341_v39 = vadd.f32 %v337_v37, %v309_v38  ;;  %v322_v40 = vpop.permute.xlu1 %321 }
  0x9b   : > { %v336_v42 = vmul.f32 %v322_v40, %v313_v24 }
  0x9c   : > { %v350_v44 = vmul.f32 %v2013_v23, %v341_v39 }
  0x9d   : > { %v340_v43 = vadd.f32 %v336_v42, %v308_v41 }
  0x9e   : > { %v354_v48 = vmax.f32 %v350_v44, 0.0 }
  0x9f   : > { %v349_v45 = vmul.f32 %v2013_v23, %v340_v43  ;;  %v494_v10 = vpop.permute.xlu0 %493 }
  0xa1   : > { %v353_v47 = vmax.f32 %v349_v45, 0.0  ;;  %v365_v52 = vpack.c.bf16 %v350_v44, %v349_v45  ;;  %v1670_v45 = vld [vmem:[%s2506_s1 + $0x50] sm:$0xff] }
  0xa2   : > { %v498_v9 = vpop.permute.xlu1 %497 }
  0xa3   : > { %v367_v49 = vpack.c.bf16 %v354_v48, %v353_v47 }
  0xa5   : > { %407 = vmatpush.bf16.msra.mxu0 %v367_v49  ;;  %1826 = vmatpush.bf16.msra.mxu2 %v367_v49 }
  0xa8   : > { %v470_v13 = vpop.permute.xlu0 %469 }
  0xa9   : > { %408 = vmatpush.bf16.msra.mxu0 %v366_v50  ;;  %1827 = vmatpush.bf16.msra.mxu2 %v366_v50  ;;  %v1668_v50 = vld [vmem:[%s2506_s1 + $0x40] sm:$0xff] }
  0xad   : > { %409 = vmatpush.bf16.msra.mxu0 %v365_v52  ;;  %1828 = vmatpush.bf16.msra.mxu2 %v365_v52  ;;  %v1807_v52 = vld [vmem:[%s2507_s2 + $0x30] sm:$0xff] }
  0xb0   : > { %1634 = vmatmul.msk.bf16.vlgmr.msra.gmra.mxu2 %vm389_vm1, %v1803_v53  ;;  %v1808_v53 = vld [vmem:[%s2507_s2 + $0x38] sm:$0xff] }
  0xc0   : > { %1635 = vmatmul.msk.bf16.gmra.mxu2 %vm389_vm1, %v1804_v54 }
 0x133   : > { %v421_v55 = vpop.f32.mrf.mxu2 }
 0x134   : > { %v431_v56 = vadd.f32 %v421_v55, %v313_v24 }
 0x136   : > { %v2037_v57 = vmul.f32 %v2013_v23, %v431_v56 }
 0x138   : > { %444 = vrot.lane.b32.xlu2 %v2037_v57, %s1920_s29 }
 0x13b   : > { %v423_v58 = vpop.f32.mrf.mxu2 }
 0x13c   : > { %v432_v59 = vadd.f32 %v423_v58, %v315_v36 }
 0x13e   : > { %v2042_v60 = vmul.f32 %v2013_v23, %v432_v59 }
 0x140   : > { %478 = vrot.lane.b32.xlu2 %v2042_v60, %s1918_s9  ;;  %446 = vrot.lane.b32.xlu1 %v2042_v60, %s1920_s29 }
 0x143   : > { %v426_v61 = vpop.f32.mrf.mxu2 }
 0x144   : > { %v433_v62 = vadd.f32 %v426_v61, %v2004_v15 }
 0x146   : > { %v2050_v63 = vmul.f32 %v2013_v23, %v433_v62 }
 0x148   : > { %476 = vrot.lane.b32.xlu1 %v2037_v57, %s1918_s9  ;;  %448 = vrot.lane.b32.xlu0 %v2050_v63, %s1920_s29 }
 0x14b   : > { %v428_v0 = vpop.f32.mrf.mxu2 }
 0x14c   : > { %v434_v3 = vadd.f32 %v428_v0, %v2010_v21 }
 0x14e   : > { %v2061_v5 = vmul.f32 %v2013_v23, %v434_v3 }
 0x150   : > { %480 = vrot.lane.b32.xlu1 %v2050_v63, %s1918_s9  ;;  %459 = vperm.xlu0 %1854, %v1637_v4  }
 0x151   : > { %482 = vrot.lane.b32.xlu2 %v2061_v5, %s1918_s9 }
 0x158   : > { %450 = vrot.lane.b32.xlu1 %v2061_v5, %s1920_s29  ;;  %1857 = vset.pattern.permute.xlu0 %v1917_v2 }
 0x159   : > { %489 = vperm.xlu2 %1855, %v1637_v4   ;;  %656 = vperm.xlu0 %1857, %v1670_v45  }
 0x160   : > { %485 = vperm.xlu1 %1851, %v1636_v51  }
 0x161   : > { %1856 = vset.pattern.permute.xlu2 %v1916_v1  ;;  %1858 = vset.pattern.permute.xlu0 %v1916_v1 }
 0x162   : > { %627 = vperm.xlu2 %1856, %v1670_v45   ;;  %632 = vperm.xlu0 %1858, %v1671_v6  }
 0x168   : > { %660 = vperm.xlu1 %1851, %v1671_v6  }
 0x16a   : > { %617 = vperm.xlu2 %1856, %v1668_v50  }
 0x172   : > { %1859 = vset.pattern.permute.xlu2 %v1917_v2 }
 0x192   : > { %v445_v11 = vpop.permute.xlu2 %444 }
 0x193   : > { %v472_v39 = vmul.f32 %v455_v8, %v445_v11 }
 0x19a   : > { %v479_v14 = vpop.permute.xlu2 %478 }
 0x1ab   : > { %v483_v18 = vpop.permute.xlu2 %482 }
 0x1ac   : > { %v503_v27 = vmul.f32 %v498_v9, %v483_v18 }
 0x1b2   : > { %v447_v12 = vpop.permute.xlu1 %446 }
 0x1b3   : > { %v490_v29 = vpop.permute.xlu2 %489 }
 0x1b4   : > { %v501_v33 = vmul.f32 %v490_v29, %v479_v14 }
 0x1ba   : > { %v477_v15 = vpop.permute.xlu1 %476  ;;  %v449_v17 = vpop.permute.xlu0 %448 }
 0x1bb   : > { %v474_v21 = vmul.f32 %v465_v7, %v449_v17  ;;  %v1805_v17 = vld [vmem:[%s2507_s2 + $0x20] sm:$0xff] }
 0x1c2   : > { %v481_v19 = vpop.permute.xlu1 %480  ;;  %v460_v25 = vpop.permute.xlu0 %459 }
 0x1c3   : > { %v502_v20 = vmul.f32 %v494_v10, %v481_v19  ;;  %v473_v31 = vmul.f32 %v460_v25, %v447_v12 }
 0x1c5   : > { %v506_v24 = vadd.f32 %v502_v20, %v474_v21  ;;  %v505_v35 = vadd.f32 %v501_v33, %v473_v31 }
 0x1c7   : > { %v510_v30 = vmul.f32 %v2013_v23, %v506_v24  ;;  %v509_v42 = vmul.f32 %v2013_v23, %v505_v35  ;;  %v1802_v35 = vld [vmem:[%s2507_s2 + $0x8] sm:$0xff] }
 0x1c9   : > { %v514_v36 = vmax.f32 %v510_v30, 0.0  ;;  %v513_v47 = vmax.f32 %v509_v42, 0.0 }
 0x1ca   : > { %v451_v26 = vpop.permute.xlu1 %450 }
 0x1cb   : > { %v475_v28 = vmul.f32 %v470_v13, %v451_v26  ;;  %v657_v8 = vpop.permute.xlu0 %656 }
 0x1cd   : > { %v507_v32 = vadd.f32 %v503_v27, %v475_v28 }
 0x1cf   : > { %v511_v34 = vmul.f32 %v2013_v23, %v507_v32 }
 0x1d1   : > { %v515_v37 = vmax.f32 %v511_v34, 0.0  ;;  %v526_v49 = vpack.c.bf16 %v511_v34, %v510_v30 }
 0x1d2   : > { %v486_v38 = vpop.permute.xlu1 %485 }
 0x1d3   : > { %v500_v40 = vmul.f32 %v486_v38, %v477_v15  ;;  %v528_v41 = vpack.c.bf16 %v515_v37, %v514_v36  ;;  %v1801_v15 = vld [vmem:[%s2507_s2] sm:$0xff]  ;;  %v1806_v36 = vld [vmem:[%s2507_s2 + $0x28] sm:$0xff] }
 0x1d4   : > { %v633_v11 = vpop.permute.xlu0 %632  ;;  %1632 = vmatmul.msk.bf16.vlgmr.msra.gmra.mxu0 %vm389_vm1, %v1801_v15 }
 0x1d5   : > { %v504_v43 = vadd.f32 %v500_v40, %v472_v39  ;;  %565 = vmatpush.bf16.msra.mxu1 %v528_v41  ;;  %1829 = vmatpush.bf16.msra.mxu3 %v528_v41 }
 0x1d7   : > { %v508_v44 = vmul.f32 %v2013_v23, %v504_v43 }
 0x1d9   : > { %v512_v46 = vmax.f32 %v508_v44, 0.0  ;;  %v525_v51 = vpack.c.bf16 %v509_v42, %v508_v44 }
 0x1da   : > { %v661_v7 = vpop.permute.xlu1 %660 }
 0x1db   : > { %v527_v48 = vpack.c.bf16 %v513_v47, %v512_v46 }
 0x1dd   : > { %566 = vmatpush.bf16.msra.mxu1 %v527_v48  ;;  %1830 = vmatpush.bf16.msra.mxu3 %v527_v48 }
 0x1e1   : > { %567 = vmatpush.bf16.msra.mxu1 %v526_v49  ;;  %1831 = vmatpush.bf16.msra.mxu3 %v526_v49 }
 0x1e4   : > { %1633 = vmatmul.msk.bf16.gmra.mxu0 %vm389_vm1, %v1802_v35 }
 0x1e5   : > { %568 = vmatpush.bf16.msra.mxu1 %v525_v51  ;;  %1832 = vmatpush.bf16.msra.mxu3 %v525_v51 }
 0x1e8   : > { %1666 = vmatmul.msk.bf16.vlgmr.msra.gmra.mxu3 %vm389_vm1, %v1807_v52  ;;  %1664 = vmatmul.msk.bf16.vlgmr.msra.gmra.mxu1 %vm389_vm1, %v1805_v17  ;;  %v1809_v52 = vld [vmem:[%s2507_s2 + $0x40] sm:$0xff] }
 0x1f8   : > { %1667 = vmatmul.msk.bf16.gmra.mxu3 %vm389_vm1, %v1808_v53  ;;  %1665 = vmatmul.msk.bf16.gmra.mxu1 %vm389_vm1, %v1806_v36  ;;  %v1810_v53 = vld [vmem:[%s2507_s2 + $0x48] sm:$0xff] }
 0x26b   : > { %v580_v54 = vpop.f32.mrf.mxu3 }
 0x26c   : > { %v590_v55 = vadd.f32 %v580_v54, %v2037_v57  ;;  %v411_v54 = vpop.f32.mrf.mxu0 }
 0x26e   : > { %v594_v56 = vmul.f32 %v2013_v23, %v590_v55  ;;  %v570_v55 = vpop.f32.mrf.mxu1 }
 0x270   : > { %607 = vrot.lane.b32.xlu2 %v594_v56, %s1921_s20 }
 0x273   : > { %v582_v58 = vpop.f32.mrf.mxu3 }
 0x274   : > { %v591_v59 = vadd.f32 %v582_v58, %v2042_v60  ;;  %v1669_v60 = vld [vmem:[%s2506_s1 + $0x48] sm:$0xff]  ;;  %v413_v58 = vpop.f32.mrf.mxu0 }
 0x276   : > { %v595_v61 = vmul.f32 %v2013_v23, %v591_v59  ;;  %v572_v59 = vpop.f32.mrf.mxu1 }
 0x278   : > { %641 = vrot.lane.b32.xlu2 %v595_v61, %s1922_s21  ;;  %609 = vrot.lane.b32.xlu1 %v595_v61, %s1921_s20 }
 0x27b   : > { %v585_v62 = vpop.f32.mrf.mxu3 }
 0x27c   : > { %v592_v0 = vadd.f32 %v585_v62, %v2050_v63  ;;  %v628_v63 = vpop.permute.xlu2 %627 }
 0x27e   : > { %v596_v57 = vmul.f32 %v2013_v23, %v592_v0 }
 0x280   : > { %639 = vrot.lane.b32.xlu1 %v594_v56, %s1922_s21  ;;  %611 = vrot.lane.b32.xlu0 %v596_v57, %s1921_s20  ;;  %v598_v56 = vadd.f32 %v570_v55, %v411_v54 }
 0x283   : > { %v587_v3 = vpop.f32.mrf.mxu3 }
 0x284   : > { %v593_v4 = vadd.f32 %v587_v3, %v2061_v5  ;;  %v618_v5 = vpop.permute.xlu2 %617 }
 0x286   : > { %v597_v6 = vmul.f32 %v2013_v23, %v593_v4 }
 0x288   : > { %643 = vrot.lane.b32.xlu1 %v596_v57, %s1922_s21  ;;  %622 = vperm.xlu0 %1858, %v1669_v60   ;;  %v599_v57 = vadd.f32 %v572_v59, %v413_v58 }
 0x289   : > { %645 = vrot.lane.b32.xlu2 %v597_v6, %s1922_s21 }
 0x290   : > { %613 = vrot.lane.b32.xlu1 %v597_v6, %s1921_s20  ;;  %v575_v6 = vpop.f32.mrf.mxu1 }
 0x291   : > { %652 = vperm.xlu2 %1859, %v1669_v60   ;;  %v416_v60 = vpop.f32.mrf.mxu0 }
 0x298   : > { %648 = vperm.xlu1 %1851, %v1668_v50  }
 0x299   : > { %1861 = vset.pattern.permute.xlu2 %v1916_v1 }
 0x2a0   : > { %1860 = vset.pattern.permute.xlu1 %v1916_v1 }
 0x2ca   : > { %v608_v9 = vpop.permute.xlu2 %607 }
 0x2cb   : > { %v635_v41 = vmul.f32 %v618_v5, %v608_v9  ;;  %v600_v5 = vadd.f32 %v575_v6, %v416_v60  ;;  %v2229_v60 = vld [vmem:[%s2511_s6 + $0x10] sm:$0xff]  ;;  %v2234_v6 = vld [vmem:[%s2511_s6] sm:$0xff] }
 0x2d2   : > { %v642_v12 = vpop.permute.xlu2 %641 }
 0x2e3   : > { %v646_v18 = vpop.permute.xlu2 %645 }
 0x2e4   : > { %v666_v27 = vmul.f32 %v661_v7, %v646_v18 }
 0x2ea   : > { %v610_v10 = vpop.permute.xlu1 %609 }
 0x2eb   : > { %v653_v29 = vpop.permute.xlu2 %652 }
 0x2ec   : > { %v664_v33 = vmul.f32 %v653_v29, %v642_v12 }
 0x2f2   : > { %v640_v13 = vpop.permute.xlu1 %639  ;;  %v612_v14 = vpop.permute.xlu0 %611 }
 0x2f3   : > { %v637_v21 = vmul.f32 %v628_v63, %v612_v14 }
 0x2fa   : > { %v644_v19 = vpop.permute.xlu1 %643  ;;  %v623_v25 = vpop.permute.xlu0 %622 }
 0x2fb   : > { %v665_v20 = vmul.f32 %v657_v8, %v644_v19  ;;  %v636_v30 = vmul.f32 %v623_v25, %v610_v10  ;;  %v418_v10 = vpop.f32.mrf.mxu0 }
 0x2fd   : > { %v669_v24 = vadd.f32 %v665_v20, %v637_v21  ;;  %v668_v37 = vadd.f32 %v664_v33, %v636_v30  ;;  %v2162_v20 = vld [vmem:[%s2508_s3 + $0x8] sm:$0xff] }
 0x2ff   : > { %v673_v31 = vmul.f32 %v2013_v23, %v669_v24  ;;  %v672_v44 = vmul.f32 %v2013_v23, %v668_v37 }
 0x301   : > { %v677_v38 = vmax.f32 %v673_v31, 0.0  ;;  %v676_v48 = vmax.f32 %v672_v44, 0.0 }
 0x302   : > { %v614_v26 = vpop.permute.xlu1 %613 }
 0x303   : > { %v638_v28 = vmul.f32 %v633_v11, %v614_v26  ;;  %v577_v11 = vpop.f32.mrf.mxu1  ;;  %v2167_v26 = vld [vmem:[%s2508_s3] sm:$0xff] }
 0x304   : > { %v601_v12 = vadd.f32 %v577_v11, %v418_v10 }
 0x305   : > { %v670_v32 = vadd.f32 %v666_v27, %v638_v28 }
 0x307   : > { %v674_v34 = vmul.f32 %v2013_v23, %v670_v32 }
 0x309   : > { %v678_v39 = vmax.f32 %v674_v34, 0.0  ;;  %v689_v50 = vpack.c.bf16 %v674_v34, %v673_v31  ;;  %v2181_v31 = vld [vmem:[%s2508_s3 + $0x18] sm:$0xff] }
 0x30a   : > { %v649_v40 = vpop.permute.xlu1 %648 }
 0x30b   : > { %v663_v42 = vmul.f32 %v649_v40, %v640_v13  ;;  %v691_v43 = vpack.c.bf16 %v678_v39, %v677_v38 }
 0x30d   : > { %v667_v45 = vadd.f32 %v663_v42, %v635_v41  ;;  %728 = vmatpush.bf16.msrb.mxu2 %v691_v43 }
 0x30f   : > { %v671_v46 = vmul.f32 %v2013_v23, %v667_v45 }
 0x311   : > { %v675_v47 = vmax.f32 %v671_v46, 0.0  ;;  %v688_v51 = vpack.c.bf16 %v672_v44, %v671_v46  ;;  %v2190_v46 = vld [vmem:[%s2509_s4] sm:$0x1] }
 0x313   : > { %v690_v49 = vpack.c.bf16 %v676_v48, %v675_v47 }
 0x315   : > { %729 = vmatpush.bf16.msrb.mxu2 %v690_v49 }
 0x319   : > { %730 = vmatpush.bf16.msrb.mxu2 %v689_v50  ;;  %v2196_v50 = vld [vmem:[%s2510_s5 + $0x18] sm:$0xff] }
 0x31d   : > { %731 = vmatpush.bf16.msrb.mxu2 %v688_v51  ;;  %v2201_v51 = vld [vmem:[%s2510_s5 + $0x10] sm:$0xff] }
 0x320   : > { %1696 = vmatmul.msk.bf16.vlgmr.msrb.gmra.mxu2 %vm389_vm1, %v1809_v52  ;;  %v2206_v52 = vld [vmem:[%s2510_s5] sm:$0xff] }
 0x330   : > { %1697 = vmatmul.msk.bf16.gmra.mxu2 %vm389_vm1, %v1810_v53 }
 0x3a3   : > { %v733_v61 = vpop.f32.mrf.mxu2 }
 0x3a4   : > { %v749_v62 = vadd.f32 %v733_v61, %v598_v56 }
 0x3a6   : > { %v2144_v0 = vmul.f32 %v2013_v23, %v749_v62  ;;  %v2217_v62 = vld [vmem:[%s2510_s5 + $0x8] sm:$0xff] }
 0x3a8   : > { %757 = vadd.xlane.f32.xlu0 %v2144_v0 }
 0x3ab   : > { %v735_v3 = vpop.f32.mrf.mxu2 }
 0x3ac   : > { %v750_v4 = vadd.f32 %v735_v3, %v599_v57 }
 0x3ae   : > { %v2148_v63 = vmul.f32 %v2013_v23, %v750_v4  ;;  %v2224_v4 = vld [vmem:[%s2511_s6 + $0x18] sm:$0xff] }
 0x3b0   : > { %759 = vadd.xlane.f32.xlu1 %v2148_v63 }
 0x3b3   : > { %v738_v7 = vpop.f32.mrf.mxu2 }
 0x3b4   : > { %v751_v8 = vadd.f32 %v738_v7, %v600_v5 }
 0x3b6   : > { %v2152_v9 = vmul.f32 %v2013_v23, %v751_v8 }
 0x3b8   : > { %761 = vadd.xlane.f32.xlu2 %v2152_v9 }
 0x3bb   : > { %v740_v13 = vpop.f32.mrf.mxu2 }
 0x3bc   : > { %v752_v14 = vadd.f32 %v740_v13, %v601_v12 }
 0x3be   : > { %v2156_v15 = vmul.f32 %v2013_v23, %v752_v14  ;;  %v2172_v23 = vld [vmem:[%s2508_s3 + $0x10] sm:$0xff] }
 0x3c0   : > { %763 = vadd.xlane.f32.xlu2 %v2156_v15 }
 0x41b   : > { %v758_v18 = vpop.xlane.xlu0 %757 }
 0x41c   : > { %v765_v24 = vmul.f32 0.06666667, %v758_v18 }
 0x41e   : > { %v773_v28 = vmul.f32 %v2167_v26, %v765_v24  ;;  %v2242_v24 = vld [vmem:[%s2511_s6 + $0x8] sm:$0xff] }
 0x420   : > { %v778_v33 = vsel %vm777_vm2, %v773_v28, 0.0 }
 0x423   : > { %v760_v17 = vpop.xlane.xlu1 %759 }
 0x424   : > { %v766_v19 = vmul.f32 0.06666667, %v760_v17 }
 0x426   : > { %v774_v27 = vmul.f32 %v2162_v20, %v766_v19 }
 0x428   : > { %v779_v30 = vsel %vm777_vm2, %v774_v27, 0.0 }
 0x429   : > { %v780_v36 = vadd.f32 %v779_v30, %v778_v33 }
 0x42b   : > { %v762_v21 = vpop.xlane.xlu2 %761 }
 0x42c   : > { %v767_v25 = vmul.f32 0.06666667, %v762_v21 }
 0x42e   : > { %v775_v29 = vmul.f32 %v2172_v23, %v767_v25 }
 0x430   : > { %v781_v34 = vsel %vm777_vm2, %v775_v29, 0.0 }
 0x431   : > { %v782_v38 = vadd.f32 %v781_v34, %v780_v36 }
 0x433   : > { %v764_v32 = vpop.xlane.xlu2 %763 }
 0x434   : > { %v768_v35 = vmul.f32 0.06666667, %v764_v32 }
 0x436   : > { %v776_v37 = vmul.f32 %v2181_v31, %v768_v35 }
 0x438   : > { %v783_v39 = vsel %vm777_vm2, %v776_v37, 0.0 }
 0x439   : > { %v784_v40 = vadd.f32 %v783_v39, %v782_v38 }
 0x43b   : > { %v785_v41 = vrot.slane %v784_v40, 4 }
 0x43d   : > { %v786_v42 = vadd.f32 %v785_v41, %v784_v40 }
 0x43f   : > { %v787_v43 = vrot.slane %v786_v42, 2 }
 0x441   : > { %v788_v44 = vadd.f32 %v787_v43, %v786_v42 }
 0x443   : > { %v789_v45 = vrot.slane %v788_v44, 1 }
 0x445   : > { %v790_v47 = vadd.f32 %v789_v45, %v788_v44 }
 0x447   : > { %v792_v48 = vadd.f32 %v2190_v46, %v790_v47 }
 0x449   : > { %v793_v49 = vmax.f32 %v792_v48, 0.0 }
 0x44b   : > { %v798_v53 = vperm.slane %v793_v49, 0 }
 0x44d   : > { %v802_v54 = vmul.f32 %v798_v53, %v2196_v50  ;;  %v801_v55 = vmul.f32 %v798_v53, %v2201_v51  ;;  %v799_v56 = vmul.f32 %v798_v53, %v2206_v52  ;;  %v800_v57 = vmul.f32 %v798_v53, %v2217_v62 }
 0x44f   : > { %v812_v58 = vsel %vm777_vm2, %v802_v54, 0.0  ;;  %v809_v59 = vsel %vm777_vm2, %v801_v55, 0.0  ;;  %v803_v61 = vsel %vm777_vm2, %v799_v56, 0.0  ;;  %v806_v3 = vsel %vm777_vm2, %v800_v57, 0.0 }
 0x450   : > { %813 = vadd.xlane.f32.xlu1 %v812_v58  ;;  %810 = vadd.xlane.f32.xlu0 %v809_v59 }
 0x451   : > { %804 = vadd.xlane.f32.xlu2 %v803_v61 }
 0x458   : > { %807 = vadd.xlane.f32.xlu0 %v806_v3 }
 0x4c3   : > { %v814_v5 = vpop.xlane.xlu1 %813  ;;  %v811_v7 = vpop.xlane.xlu0 %810 }
 0x4c4   : > { %v822_v8 = vadd.f32 %v2224_v4, %v814_v5  ;;  %v821_v10 = vadd.f32 %v2229_v60, %v811_v7  ;;  %v805_v11 = vpop.xlane.xlu2 %804 }
 0x4c5   : > { %v819_v12 = vadd.f32 %v2234_v6, %v805_v11 }
 0x4c6   : > { %v826_v13 = vsub.f32 0.0, %v822_v8  ;;  %v825_v14 = vsub.f32 0.0, %v821_v10 }
 0x4c7   : > { %v823_v17 = vsub.f32 0.0, %v819_v12 }
 0x4c8   : > { %v833_v18 = vmul.f32 1.442695, %v826_v13  ;;  %v831_v19 = vmul.f32 1.442695, %v825_v14 }
 0x4c9   : > { %v827_v21 = vmul.f32 1.442695, %v823_v17 }
 0x4ca   : > { %1876 = vpow2.f32 %v833_v18 }
 0x4cb   : > { %1878 = vpow2.f32 %v831_v19  ;;  %v808_v25 = vpop.xlane.xlu0 %807 }
 0x4cc   : > { %1880 = vpow2.f32 %v827_v21  ;;  %v820_v27 = vadd.f32 %v2242_v24, %v808_v25 }
 0x4ce   : > { %v824_v28 = vsub.f32 0.0, %v820_v27 }
 0x4d0   : > { %v1877_v29 = vpop.eup %1876  ;;  %v829_v30 = vmul.f32 1.442695, %v824_v28 }
 0x4d1   : > { %v1879_v32 = vpop.eup %1878  ;;  %v838_v33 = vadd.f32 1.0, %v1877_v29 }
 0x4d2   : > { %v1881_v34 = vpop.eup %1880  ;;  %v837_v35 = vadd.f32 1.0, %v1879_v32  ;;  %1882 = vpow2.f32 %v829_v30 }
 0x4d3   : > { %1884 = vrcp.f32 %v838_v33  ;;  %v835_v36 = vadd.f32 1.0, %v1881_v34  ;;  %vm889_vm3 = vweird.f32 %v838_v33  ;;  %v893_v48 = vand.u32 2147483647, %v838_v33  ;;  %v1703_v34 = vld [vmem:[%s2506_s1 + $0x78] sm:$0xff] }
 0x4d4   : > { %1886 = vrcp.f32 %v837_v35  ;;  %vm874_vm4 = vweird.f32 %v837_v35  ;;  %v895_v49 = vand.u32 2147483648, %v838_v33  ;;  %v880_v53 = vand.u32 2147483648, %v837_v35 }
 0x4d5   : > { %1888 = vrcp.f32 %v835_v36  ;;  %v878_v58 = vand.u32 2147483647, %v837_v35  ;;  %v850_v59 = vand.u32 2147483648, %v835_v36  ;;  %v848_v3 = vand.u32 2147483647, %v835_v36 }
 0x4d6   : > { %vm894_vm9 = vcmp.eq.f32.partialorder %v893_v48, 8.507059e+37  ;;  %v896_v8 = vor.u32 1.1754944e-38, %v895_v49  ;;  %vm844_vm10 = vweird.f32 %v835_v36  ;;  %v881_v10 = vor.u32 1.1754944e-38, %v880_v53 }
 0x4d7   : > { %vm879_vm12 = vcmp.eq.f32.partialorder %v878_v58, 8.507059e+37  ;;  %v851_v18 = vor.u32 1.1754944e-38, %v850_v59  ;;  %vm849_vm14 = vcmp.eq.f32.partialorder %v848_v3, 8.507059e+37 }
 0x4d8   : > { %v1883_v37 = vpop.eup %1882 }
 0x4d9   : > { %v1885_v38 = vpop.eup %1884  ;;  %v836_v39 = vadd.f32 1.0, %v1883_v37  ;;  %v1702_v37 = vld [vmem:[%s2506_s1 + $0x70] sm:$0xff] }
 0x4da   : > { %v1887_v40 = vpop.eup %1886  ;;  %v885_v41 = vmul.f32 %v1885_v38, %v838_v33  ;;  %vm890_vm5 = vweird.f32 %v1885_v38 }
 0x4db   : > { %v1889_v42 = vpop.eup %1888  ;;  %1890 = vrcp.f32 %v836_v39  ;;  %v870_v43 = vmul.f32 %v1887_v40, %v837_v35  ;;  %vm875_vm6 = vweird.f32 %v1887_v40  ;;  %vm891_vm8 = vmor %vm889_vm3, %vm890_vm5  ;;  %v865_v28 = vand.u32 2147483648, %v836_v39 }
 0x4dc   : > { %v886_v44 = vsub.f32 1.0, %v885_v41  ;;  %v840_v45 = vmul.f32 %v1889_v42, %v835_v36  ;;  %vm845_vm7 = vweird.f32 %v1889_v42  ;;  %vm876_vm11 = vmor %vm874_vm4, %vm875_vm6  ;;  %v863_v30 = vand.u32 2147483647, %v836_v39 }
 0x4dd   : > { %v871_v47 = vsub.f32 1.0, %v870_v43  ;;  %vm846_vm13 = vmor %vm844_vm10, %vm845_vm7  ;;  %vm859_vm0 = vweird.f32 %v836_v39  ;;  %v866_v33 = vor.u32 1.1754944e-38, %v865_v28  ;;  %vm984_vm5 = vcmp.lt.s32.totalorder %v2006_v16, 14 }
 0x4de   : > { %v887_v54 = vmul.f32 %v1885_v38, %v886_v44  ;;  %v841_v55 = vsub.f32 1.0, %v840_v45  ;;  %vm864_vm4 = vcmp.eq.f32.partialorder %v863_v30, 8.507059e+37 }
 0x4df   : > { %v872_v56 = vmul.f32 %v1887_v40, %v871_v47 }
 0x4e0   : > { %v888_v61 = vadd.f32 %v1885_v38, %v887_v54  ;;  %v842_v57 = vmul.f32 %v1889_v42, %v841_v55 }
 0x4e1   : > { %v1891_v5 = vpop.eup %1890  ;;  %v873_v7 = vadd.f32 %v1887_v40, %v872_v56 }
 0x4e2   : > { %v892_v11 = vsel %vm891_vm8, %v1885_v38, %v888_v61  ;;  %v843_v12 = vadd.f32 %v1889_v42, %v842_v57  ;;  %v855_v13 = vmul.f32 %v1891_v5, %v836_v39  ;;  %vm860_vm15 = vweird.f32 %v1891_v5  ;;  %v1700_v38 = vld [vmem:[%s2506_s1 + $0x60] sm:$0xff]  ;;  %v1701_v39 = vld [vmem:[%s2506_s1 + $0x68] sm:$0xff] }
 0x4e3   : > { %v877_v14 = vsel %vm876_vm11, %v1887_v40, %v873_v7  ;;  %v897_v17 = vsel %vm894_vm9, %v896_v8, %v892_v11  ;;  %vm861_vm3 = vmor %vm859_vm0, %vm860_vm15  ;;  %v2285_v57 = vsel %vm984_vm5, 1.0, %v1919_v22 }
 0x4e4   : > { %v882_v19 = vsel %vm879_vm12, %v881_v10, %v877_v14  ;;  %916 = vperm.xlu2 %1861, %v897_v17   ;;  %v847_v21 = vsel %vm846_vm13, %v1889_v42, %v843_v12  ;;  %v856_v25 = vsub.f32 1.0, %v855_v13  ;;  %v2270_v42 = vld [vmem:[%s2506_s1 + $0x98] sm:$0xff] }
 0x4e5   : > { %911 = vperm.xlu1 %1860, %v882_v19   ;;  %v852_v27 = vsel %vm849_vm14, %v851_v18, %v847_v21 }
 0x4e6   : > { %901 = vperm.xlu0 %1858, %v852_v27   ;;  %v857_v29 = vmul.f32 %v1891_v5, %v856_v25 }
 0x4e8   : > { %v858_v32 = vadd.f32 %v1891_v5, %v857_v29 }
 0x4ea   : > { %v862_v35 = vsel %vm861_vm3, %v1891_v5, %v858_v32 }
 0x4eb   : > { %v867_v36 = vsel %vm864_vm4, %v866_v33, %v862_v35 }
 0x4ec   : > { %945 = vperm.xlu2 %1861, %v1703_v34  }
 0x4ed   : > { %906 = vperm.xlu1 %1860, %v867_v36  }
 0x4ee   : > { %940 = vperm.xlu0 %1858, %v1702_v37  }
 0x4f4   : > { %1862 = vset.pattern.permute.xlu2 %v1917_v2 }
 0x4f5   : > { %969 = vperm.xlu2 %1862, %v1702_v37   ;;  %1863 = vset.pattern.permute.xlu1 %v1917_v2  ;;  %v1813_v37 = vld [vmem:[%s2507_s2 + $0x60] sm:$0xff] }
 0x4f6   : > { %930 = vperm.xlu0 %1858, %v1700_v38   ;;  %973 = vperm.xlu1 %1863, %v1703_v34  }
 0x4fd   : > { %1864 = vset.pattern.permute.xlu2 %v1916_v1 }
 0x4fe   : > { %935 = vperm.xlu2 %1864, %v1701_v39   ;;  %1867 = vset.pattern.permute.xlu0 %v1917_v2 }
 0x506   : > { %1865 = vset.pattern.permute.xlu2 %v1917_v2 }
 0x507   : > { %961 = vperm.xlu2 %1865, %v1700_v38   ;;  %v1814_v38 = vld [vmem:[%s2507_s2 + $0x68] sm:$0xff] }
 0x50f   : > { %1135 = vperm.xlu2 %1865, %v2270_v42  }
 0x53e   : > { %v917_v40 = vpop.permute.xlu2 %916 }
 0x53f   : > { %v922_v41 = vmul.f32 %v917_v40, %v2156_v15  ;;  %v1816_v40 = vld [vmem:[%s2507_s2 + $0x78] sm:$0xff] }
 0x541   : > { %958 = vrot.lane.b32.xlu0 %v922_v41, %s1918_s9 }
 0x546   : > { %v946_v53 = vpop.permute.xlu2 %945 }
 0x547   : > { %v951_v59 = vmul.f32 %v946_v53, %v922_v41  ;;  %v1735_v41 = vld [vmem:[%s2506_s1 + $0x90] sm:$0xff] }
 0x54f   : > { %v970_v55 = vpop.permute.xlu2 %969 }
 0x557   : > { %v912_v43 = vpop.permute.xlu1 %911 }
 0x558   : > { %v921_v44 = vmul.f32 %v912_v43, %v2152_v9  ;;  %v902_v45 = vpop.permute.xlu0 %901  ;;  %v1733_v43 = vld [vmem:[%s2506_s1 + $0x80] sm:$0xff] }
 0x559   : > { %v919_v48 = vmul.f32 %v902_v45, %v2144_v0 }
 0x55a   : > { %956 = vrot.lane.b32.xlu1 %v921_v44, %s1918_s9 }
 0x55f   : > { %v907_v47 = vpop.permute.xlu1 %906 }
 0x560   : > { %v920_v15 = vmul.f32 %v907_v47, %v2148_v63  ;;  %v941_v49 = vpop.permute.xlu0 %940  ;;  %v936_v63 = vpop.permute.xlu2 %935 }
 0x561   : > { %v950_v3 = vmul.f32 %v941_v49, %v921_v44 }
 0x562   : > { %952 = vrot.lane.b32.xlu1 %v919_v48, %s1918_s9  ;;  %954 = vrot.lane.b32.xlu0 %v920_v15, %s1918_s9  ;;  %v949_v27 = vmul.f32 %v936_v63, %v920_v15 }
 0x568   : > { %v931_v54 = vpop.permute.xlu0 %930  ;;  %v974_v9 = vpop.permute.xlu1 %973 }
 0x569   : > { %v962_v17 = vpop.permute.xlu2 %961  ;;  %v948_v19 = vmul.f32 %v931_v54, %v919_v48 }
 0x56a   : > { %965 = vperm.xlu1 %1863, %v1701_v39   ;;  %v1815_v39 = vld [vmem:[%s2507_s2 + $0x70] sm:$0xff]  ;;  %1131 = vperm.xlu0 %1867, %v1735_v41  }
 0x572   : > { %1866 = vset.pattern.permute.xlu1 %v1916_v1  ;;  %1868 = vset.pattern.permute.xlu0 %v1916_v1 }
 0x573   : > { %1102 = vperm.xlu1 %1866, %v1735_v41   ;;  %1107 = vperm.xlu0 %1868, %v2270_v42  }
 0x57b   : > { %1092 = vperm.xlu1 %1866, %v1733_v43  }
 0x583   : > { %1869 = vset.pattern.permute.xlu1 %v1917_v2 }
 0x5b3   : > { %v2280_v56 = vpop.permute.xlu0 %958 }
 0x5b4   : > { %v979_v58 = vmul.f32 %v974_v9, %v2280_v56 }
 0x5b6   : > { %v983_v0 = vadd.f32 %v979_v58, %v951_v59 }
 0x5b8   : > { %v990_v8 = vmul.f32 %v2285_v57, %v983_v0 }
 0x5ba   : > { %v994_v12 = vmax.f32 %v990_v8, 0.0 }
 0x5cc   : > { %v957_v61 = vpop.permute.xlu1 %956 }
 0x5cd   : > { %v978_v5 = vmul.f32 %v970_v55, %v957_v61 }
 0x5cf   : > { %v982_v7 = vadd.f32 %v978_v5, %v950_v3  ;;  %v1734_v3 = vld [vmem:[%s2506_s1 + $0x88] sm:$0xff] }
 0x5d1   : > { %v989_v10 = vmul.f32 %v2285_v57, %v982_v7 }
 0x5d3   : > { %v993_v11 = vmax.f32 %v989_v10, 0.0  ;;  %v1005_v13 = vpack.c.bf16 %v990_v8, %v989_v10 }
 0x5d4   : > { %v953_v14 = vpop.permute.xlu1 %952  ;;  %v955_v25 = vpop.permute.xlu0 %954 }
 0x5d5   : > { %v1007_v18 = vpack.c.bf16 %v994_v12, %v993_v11  ;;  %v976_v16 = vmul.f32 %v962_v17, %v953_v14 }
 0x5d7   : > { %1044 = vmatpush.bf16.msrb.mxu3 %v1007_v18  ;;  %v980_v21 = vadd.f32 %v976_v16, %v948_v19 }
 0x5d9   : > { %v987_v29 = vmul.f32 %v2285_v57, %v980_v21 }
 0x5db   : > { %v991_v33 = vmax.f32 %v987_v29, 0.0 }
 0x5dc   : > { %v966_v22 = vpop.permute.xlu1 %965  ;;  %v1132_v12 = vpop.permute.xlu0 %1131 }
 0x5dd   : > { %v977_v28 = vmul.f32 %v966_v22, %v955_v25 }
 0x5df   : > { %v981_v30 = vadd.f32 %v977_v28, %v949_v27 }
 0x5e1   : > { %v988_v32 = vmul.f32 %v2285_v57, %v981_v30 }
 0x5e3   : > { %v992_v34 = vmax.f32 %v988_v32, 0.0  ;;  %v1004_v35 = vpack.c.bf16 %v988_v32, %v987_v29 }
 0x5e5   : > { %v1006_v36 = vpack.c.bf16 %v992_v34, %v991_v33  ;;  %v1103_v8 = vpop.permute.xlu1 %1102  ;;  %v1108_v17 = vpop.permute.xlu0 %1107 }
 0x5e7   : > { %1045 = vmatpush.bf16.msrb.mxu3 %v1006_v36 }
 0x5eb   : > { %1046 = vmatpush.bf16.msrb.mxu3 %v1005_v13 }
 0x5ed   : > { %v1093_v11 = vpop.permute.xlu1 %1092 }
 0x5ef   : > { %1047 = vmatpush.bf16.msrb.mxu3 %v1004_v35 }
 0x5f2   : > { %1729 = vmatmul.msk.bf16.vlgmr.msrb.gmra.mxu3 %vm389_vm1, %v1813_v37 }
 0x602   : > { %1730 = vmatmul.msk.bf16.gmra.mxu3 %vm389_vm1, %v1814_v38 }
 0x612   : > { %1731 = vmatmul.msk.bf16.gmra.mxu3 %vm389_vm1, %v1815_v39 }
 0x622   : > { %1732 = vmatmul.msk.bf16.gmra.mxu3 %vm389_vm1, %v1816_v40 }
 0x675   : > { %v2315_v44 = vpop.f32.mrf.mxu3 }
 0x67d   : > { %v2318_v45 = vpop.f32.mrf.mxu3 }
 0x685   : > { %v2320_v47 = vpop.f32.mrf.mxu3 }
 0x68d   : > { %v2322_v48 = vpop.f32.mrf.mxu3 }
 0x695   : > { %v1059_v15 = vpop.f32.mrf.mxu3 }
 0x696   : > { %v1069_v49 = vadd.f32 %v1059_v15, %v953_v14 }
 0x698   : > { %v2325_v53 = vmul.f32 %v2285_v57, %v1069_v49 }
 0x69a   : > { %1082 = vrot.lane.b32.xlu1 %v2325_v53, %s1920_s29 }
 0x69d   : > { %v1061_v54 = vpop.f32.mrf.mxu3 }
 0x69e   : > { %v1070_v42 = vadd.f32 %v1061_v54, %v955_v25 }
 0x6a0   : > { %v2330_v55 = vmul.f32 %v2285_v57, %v1070_v42 }
 0x6a2   : > { %1116 = vrot.lane.b32.xlu1 %v2330_v55, %s1918_s9  ;;  %1084 = vrot.lane.b32.xlu2 %v2330_v55, %s1920_s29 }
 0x6a5   : > { %v1064_v9 = vpop.f32.mrf.mxu3 }
 0x6a6   : > { %v1071_v58 = vadd.f32 %v1064_v9, %v957_v61  ;;  %v1136_v61 = vpop.permute.xlu2 %1135 }
 0x6a8   : > { %v2337_v59 = vmul.f32 %v2285_v57, %v1071_v58 }
 0x6aa   : > { %1114 = vrot.lane.b32.xlu2 %v2325_v53, %s1918_s9  ;;  %1086 = vrot.lane.b32.xlu0 %v2337_v59, %s1920_s29 }
 0x6ad   : > { %v1066_v0 = vpop.f32.mrf.mxu3 }
 0x6ae   : > { %v1072_v63 = vadd.f32 %v1066_v0, %v2280_v56  ;;  %v1768_v56 = vld [vmem:[%s2506_s1 + $0xb8] sm:$0xff] }
 0x6b0   : > { %v2348_v5 = vmul.f32 %v2285_v57, %v1072_v63 }
 0x6b2   : > { %1118 = vrot.lane.b32.xlu2 %v2337_v59, %s1918_s9  ;;  %1097 = vperm.xlu0 %1868, %v1734_v3  }
 0x6b3   : > { %1120 = vrot.lane.b32.xlu1 %v2348_v5, %s1918_s9 }
 0x6ba   : > { %1088 = vrot.lane.b32.xlu2 %v2348_v5, %s1920_s29  ;;  %1871 = vset.pattern.permute.xlu0 %v1917_v2 }
 0x6bb   : > { %1127 = vperm.xlu1 %1869, %v1734_v3  }
 0x6c2   : > { %1123 = vperm.xlu2 %1865, %v1733_v43  }
 0x6c3   : > { %1870 = vset.pattern.permute.xlu1 %v1916_v1 }
 0x6ca   : > { %1298 = vperm.xlu2 %1865, %v1768_v56  }
 0x6fc   : > { %v1085_v7 = vpop.permute.xlu2 %1084 }
 0x704   : > { %v1115_v10 = vpop.permute.xlu2 %1114 }
 0x70c   : > { %v1119_v13 = vpop.permute.xlu2 %1118  ;;  %v1083_v14 = vpop.permute.xlu1 %1082 }
 0x70d   : > { %v1140_v25 = vmul.f32 %v1132_v12, %v1119_v13  ;;  %v1110_v35 = vmul.f32 %v1093_v11, %v1083_v14  ;;  %v1820_v11 = vld [vmem:[%s2507_s2 + $0x98] sm:$0xff]  ;;  %v1767_v12 = vld [vmem:[%s2506_s1 + $0xb0] sm:$0xff]  ;;  %v1765_v13 = vld [vmem:[%s2506_s1 + $0xa0] sm:$0xff] }
 0x70e   : > { %1265 = vperm.xlu1 %1870, %v1767_v12   ;;  %1294 = vperm.xlu0 %1871, %v1767_v12  }
 0x714   : > { %v1089_v18 = vpop.permute.xlu2 %1088  ;;  %v1117_v16 = vpop.permute.xlu1 %1116 }
 0x715   : > { %v1113_v29 = vmul.f32 %v1108_v17, %v1089_v18 }
 0x716   : > { %1255 = vperm.xlu1 %1870, %v1765_v13   ;;  %1872 = vset.pattern.permute.xlu0 %v1916_v1 }
 0x717   : > { %1270 = vperm.xlu0 %1872, %v1768_v56  }
 0x71c   : > { %v1087_v19 = vpop.permute.xlu0 %1086  ;;  %v1124_v27 = vpop.permute.xlu2 %1123 }
 0x71d   : > { %v1112_v21 = vmul.f32 %v1103_v8, %v1087_v19  ;;  %v1138_v33 = vmul.f32 %v1124_v27, %v1115_v10  ;;  %v1817_v8 = vld [vmem:[%s2507_s2 + $0x80] sm:$0xff]  ;;  %v1819_v10 = vld [vmem:[%s2507_s2 + $0x90] sm:$0xff] }
 0x71e   : > { %1873 = vset.pattern.permute.xlu1 %v1917_v2 }
 0x71f   : > { %v1144_v22 = vadd.f32 %v1140_v25, %v1112_v21  ;;  %v1142_v38 = vadd.f32 %v1138_v33, %v1110_v35 }
 0x721   : > { %v1148_v32 = vmul.f32 %v2285_v57, %v1144_v22  ;;  %v1146_v54 = vmul.f32 %v2285_v57, %v1142_v38 }
 0x723   : > { %v1152_v39 = vmax.f32 %v1148_v32, 0.0  ;;  %v1150_v58 = vmax.f32 %v1146_v54, 0.0 }
 0x724   : > { %v1098_v37 = vpop.permute.xlu0 %1097 }
 0x725   : > { %v1121_v28 = vpop.permute.xlu1 %1120  ;;  %v1111_v43 = vmul.f32 %v1098_v37, %v1085_v7  ;;  %v1818_v7 = vld [vmem:[%s2507_s2 + $0x88] sm:$0xff] }
 0x726   : > { %v1141_v30 = vmul.f32 %v1136_v61, %v1121_v28 }
 0x728   : > { %v1145_v34 = vadd.f32 %v1141_v30, %v1113_v29 }
 0x72a   : > { %v1149_v36 = vmul.f32 %v2285_v57, %v1145_v34 }
 0x72c   : > { %v1153_v40 = vmax.f32 %v1149_v36, 0.0  ;;  %v1164_v3 = vpack.c.bf16 %v1149_v36, %v1148_v32 }
 0x72d   : > { %v1128_v41 = vpop.permute.xlu1 %1127 }
 0x72e   : > { %v1139_v15 = vmul.f32 %v1128_v41, %v1117_v16  ;;  %v1166_v49 = vpack.c.bf16 %v1153_v40, %v1152_v39 }
 0x730   : > { %v1143_v42 = vadd.f32 %v1139_v15, %v1111_v43  ;;  %1203 = vmatpush.bf16.msrb.mxu0 %v1166_v49 }
 0x732   : > { %v1147_v9 = vmul.f32 %v2285_v57, %v1143_v42 }
 0x734   : > { %v1151_v0 = vmax.f32 %v1147_v9, 0.0  ;;  %v1163_v61 = vpack.c.bf16 %v1147_v9, %v1146_v54 }
 0x736   : > { %v1165_v63 = vpack.c.bf16 %v1151_v0, %v1150_v58 }
 0x738   : > { %1204 = vmatpush.bf16.msrb.mxu0 %v1165_v63 }
 0x73c   : > { %1205 = vmatpush.bf16.msrb.mxu0 %v1164_v3 }
 0x740   : > { %1206 = vmatpush.bf16.msrb.mxu0 %v1163_v61 }
 0x743   : > { %1761 = vmatmul.msk.bf16.vlgmr.msrb.gmra.mxu0 %vm389_vm1, %v1817_v8 }
 0x753   : > { %1762 = vmatmul.msk.bf16.gmra.mxu0 %vm389_vm1, %v1818_v7 }
 0x763   : > { %1763 = vmatmul.msk.bf16.gmra.mxu0 %vm389_vm1, %v1819_v10 }
 0x773   : > { %1764 = vmatmul.msk.bf16.gmra.mxu0 %vm389_vm1, %v1820_v11 }
 0x780   : > { %v1266_v33 = vpop.permute.xlu1 %1265  ;;  %v1295_v36 = vpop.permute.xlu0 %1294 }
 0x788   : > { %v1256_v35 = vpop.permute.xlu1 %1255 }
 0x789   : > { %v1271_v39 = vpop.permute.xlu0 %1270 }
 0x7c0   : > { %v2388_v14 = vpop.f32.mrf.mxu0 }
 0x7c8   : > { %v2391_v17 = vpop.f32.mrf.mxu0 }
 0x7d0   : > { %v2393_v18 = vpop.f32.mrf.mxu0 }
 0x7d8   : > { %v2395_v16 = vpop.f32.mrf.mxu0 }
 0x7e0   : > { %v1218_v19 = vpop.f32.mrf.mxu0 }
 0x7e1   : > { %v1228_v21 = vadd.f32 %v1218_v19, %v2325_v53 }
 0x7e3   : > { %v1232_v25 = vmul.f32 %v2285_v57, %v1228_v21 }
 0x7e5   : > { %1245 = vrot.lane.b32.xlu1 %v1232_v25, %s1921_s20 }
 0x7e8   : > { %v1220_v22 = vpop.f32.mrf.mxu0 }
 0x7e9   : > { %v1229_v56 = vadd.f32 %v1220_v22, %v2330_v55  ;;  %v1766_v55 = vld [vmem:[%s2506_s1 + $0xa8] sm:$0xff] }
 0x7eb   : > { %v1233_v27 = vmul.f32 %v2285_v57, %v1229_v56 }
 0x7ed   : > { %1279 = vrot.lane.b32.xlu1 %v1233_v27, %s1922_s21  ;;  %1247 = vrot.lane.b32.xlu2 %v1233_v27, %s1921_s20 }
 0x7f0   : > { %v1223_v2 = vpop.f32.mrf.mxu0 }
 0x7f1   : > { %v1230_v28 = vadd.f32 %v1223_v2, %v2337_v59  ;;  %v1299_v59 = vpop.permute.xlu2 %1298 }
 0x7f3   : > { %v1234_v29 = vmul.f32 %v2285_v57, %v1230_v28 }
 0x7f5   : > { %1277 = vrot.lane.b32.xlu2 %v1232_v25, %s1922_s21  ;;  %1249 = vrot.lane.b32.xlu0 %v1234_v29, %s1921_s20 }
 0x7f8   : > { %v1225_v53 = vpop.f32.mrf.mxu0 }
 0x7f9   : > { %v1231_v30 = vadd.f32 %v1225_v53, %v2348_v5 }
 0x7fb   : > { %v1235_v32 = vmul.f32 %v2285_v57, %v1231_v30 }
 0x7fd   : > { %1281 = vrot.lane.b32.xlu2 %v1234_v29, %s1922_s21  ;;  %1260 = vperm.xlu0 %1872, %v1766_v55  }
 0x7fe   : > { %1283 = vrot.lane.b32.xlu1 %v1235_v32, %s1922_s21 }
 0x805   : > { %1251 = vrot.lane.b32.xlu2 %v1235_v32, %s1921_s20  ;;  %v1822_v32 = vld [vmem:[%s2507_s2 + $0xa8] sm:$0xff] }
 0x806   : > { %1290 = vperm.xlu1 %1873, %v1766_v55   ;;  %v1821_v55 = vld [vmem:[%s2507_s2 + $0xa0] sm:$0xff] }
 0x80d   : > { %1286 = vperm.xlu2 %1865, %v1765_v13  }
 0x80e   : > { %1874 = vset.pattern.permute.xlu1 %v1916_v1 }
 0x815   : > { %1875 = vset.pattern.permute.xlu2 %v1916_v1 }
 0x847   : > { %v1248_v5 = vpop.permute.xlu2 %1247 }
 0x84f   : > { %v1278_v34 = vpop.permute.xlu2 %1277 }
 0x857   : > { %v1282_v37 = vpop.permute.xlu2 %1281  ;;  %v1246_v38 = vpop.permute.xlu1 %1245 }
 0x858   : > { %v1303_v49 = vmul.f32 %v1295_v36, %v1282_v37  ;;  %v1273_v61 = vmul.f32 %v1256_v35, %v1246_v38  ;;  %v1237_v35 = vadd.f32 %v2391_v17, %v2318_v45  ;;  %v1239_v45 = vadd.f32 %v2395_v16, %v2322_v48 }
 0x85f   : > { %v1252_v40 = vpop.permute.xlu2 %1251  ;;  %v1280_v41 = vpop.permute.xlu1 %1279 }
 0x860   : > { %v1276_v58 = vmul.f32 %v1271_v39, %v1252_v40 }
 0x867   : > { %v1250_v43 = vpop.permute.xlu0 %1249  ;;  %v1287_v42 = vpop.permute.xlu2 %1286 }
 0x868   : > { %v1275_v15 = vmul.f32 %v1266_v33, %v1250_v43  ;;  %v1301_v63 = vmul.f32 %v1287_v42, %v1278_v34 }
 0x86a   : > { %v1307_v54 = vadd.f32 %v1303_v49, %v1275_v15  ;;  %v1305_v10 = vadd.f32 %v1301_v63, %v1273_v61 }
 0x86c   : > { %v1311_v1 = vmul.f32 %v2285_v57, %v1307_v54  ;;  %v1309_v22 = vmul.f32 %v2285_v57, %v1305_v10 }
 0x86e   : > { %v1315_v11 = vmax.f32 %v1311_v1, 0.0  ;;  %v1313_v2 = vmax.f32 %v1309_v22, 0.0 }
 0x86f   : > { %v1261_v7 = vpop.permute.xlu0 %1260 }
 0x870   : > { %v1284_v9 = vpop.permute.xlu1 %1283  ;;  %v1274_v19 = vmul.f32 %v1261_v7, %v1248_v5 }
 0x871   : > { %v1304_v0 = vmul.f32 %v1299_v59, %v1284_v9  ;;  %v1236_v59 = vadd.f32 %v2388_v14, %v2315_v44  ;;  %v1238_v44 = vadd.f32 %v2393_v18, %v2320_v47 }
 0x873   : > { %v1308_v3 = vadd.f32 %v1304_v0, %v1276_v58 }
 0x875   : > { %v1312_v8 = vmul.f32 %v2285_v57, %v1308_v3 }
 0x877   : > { %v1316_v12 = vmax.f32 %v1312_v8, 0.0  ;;  %v1327_v53 = vpack.c.bf16 %v1312_v8, %v1311_v1 }
 0x878   : > { %v1291_v13 = vpop.permute.xlu1 %1290 }
 0x879   : > { %v1302_v21 = vmul.f32 %v1291_v13, %v1280_v41  ;;  %v1329_v25 = vpack.c.bf16 %v1316_v12, %v1315_v11 }
 0x87b   : > { %v1306_v56 = vadd.f32 %v1302_v21, %v1274_v19  ;;  %1366 = vmatpush.bf16.msrb.mxu1 %v1329_v25 }
 0x87d   : > { %v1310_v27 = vmul.f32 %v2285_v57, %v1306_v56 }
 0x87f   : > { %v1314_v28 = vmax.f32 %v1310_v27, 0.0  ;;  %v1326_v30 = vpack.c.bf16 %v1310_v27, %v1309_v22 }
 0x881   : > { %v1328_v29 = vpack.c.bf16 %v1314_v28, %v1313_v2 }
 0x883   : > { %1367 = vmatpush.bf16.msrb.mxu1 %v1328_v29 }
 0x887   : > { %1368 = vmatpush.bf16.msrb.mxu1 %v1327_v53 }
 0x88b   : > { %1369 = vmatpush.bf16.msrb.mxu1 %v1326_v30 }
 0x88e   : > { %1793 = vmatmul.msk.bf16.vlgmr.msrb.gmra.mxu1 %vm389_vm1, %v1821_v55 }
 0x89e   : > { %1794 = vmatmul.msk.bf16.gmra.mxu1 %vm389_vm1, %v1822_v32 }
 0x90b   : > { %v1371_v5 = vpop.f32.mrf.mxu1 }
 0x90c   : > { %v1387_v33 = vadd.f32 %v1371_v5, %v1236_v59 }
 0x90e   : > { %v2433_v34 = vmul.f32 %v2285_v57, %v1387_v33 }
 0x910   : > { %1395 = vadd.xlane.f32.xlu0 %v2433_v34 }
 0x913   : > { %v1373_v36 = vpop.f32.mrf.mxu1 }
 0x914   : > { %v1388_v37 = vadd.f32 %v1373_v36, %v1237_v35 }
 0x916   : > { %v2439_v38 = vmul.f32 %v2285_v57, %v1388_v37 }
 0x918   : > { %1397 = vadd.xlane.f32.xlu2 %v2439_v38 }
 0x91b   : > { %v1376_v14 = vpop.f32.mrf.mxu1 }
 0x91c   : > { %v1389_v39 = vadd.f32 %v1376_v14, %v1238_v44 }
 0x91e   : > { %v2445_v40 = vmul.f32 %v2285_v57, %v1389_v39 }
 0x920   : > { %1399 = vadd.xlane.f32.xlu1 %v2445_v40 }
 0x923   : > { %v1378_v17 = vpop.f32.mrf.mxu1 }
 0x924   : > { %v1390_v41 = vadd.f32 %v1378_v17, %v1239_v45 }
 0x926   : > { %v2451_v43 = vmul.f32 %v2285_v57, %v1390_v41 }
 0x928   : > { %1401 = vadd.xlane.f32.xlu0 %v2451_v43 }
 0x983   : > { %v1396_v49 = vpop.xlane.xlu0 %1395 }
 0x984   : > { %v1403_v54 = vmul.f32 0.071428575, %v1396_v49 }
 0x986   : > { %v1407_v58 = vmul.f32 %v1403_v54, %v2167_v26 }
 0x988   : > { %v1411_v57 = vsel %vm777_vm2, %v1407_v58, 0.0 }
 0x98b   : > { %v1398_v15 = vpop.xlane.xlu2 %1397 }
 0x98c   : > { %v1404_v47 = vmul.f32 0.071428575, %v1398_v15 }
 0x98e   : > { %v1408_v9 = vmul.f32 %v1404_v47, %v2162_v20 }
 0x990   : > { %v1412_v48 = vsel %vm777_vm2, %v1408_v9, 0.0 }
 0x991   : > { %v1413_v3 = vadd.f32 %v1412_v48, %v1411_v57 }
 0x993   : > { %v1400_v18 = vpop.xlane.xlu1 %1399 }
 0x994   : > { %v1405_v42 = vmul.f32 0.071428575, %v1400_v18 }
 0x996   : > { %v1409_v0 = vmul.f32 %v1405_v42, %v2172_v23 }
 0x998   : > { %v1414_v1 = vsel %vm777_vm2, %v1409_v0, 0.0 }
 0x999   : > { %v1415_v8 = vadd.f32 %v1414_v1, %v1413_v3 }
 0x99b   : > { %v1402_v16 = vpop.xlane.xlu0 %1401 }
 0x99c   : > { %v1406_v63 = vmul.f32 0.071428575, %v1402_v16 }
 0x99e   : > { %v1410_v61 = vmul.f32 %v1406_v63, %v2181_v31 }
 0x9a0   : > { %v1416_v7 = vsel %vm777_vm2, %v1410_v61, 0.0 }
 0x9a1   : > { %v1417_v10 = vadd.f32 %v1416_v7, %v1415_v8 }
 0x9a3   : > { %v1418_v20 = vrot.slane %v1417_v10, 4 }
 0x9a5   : > { %v1419_v11 = vadd.f32 %v1418_v20, %v1417_v10 }
 0x9a7   : > { %v1420_v26 = vrot.slane %v1419_v11, 2 }
 0x9a9   : > { %v1421_v12 = vadd.f32 %v1420_v26, %v1419_v11 }
 0x9ab   : > { %v1422_v23 = vrot.slane %v1421_v12, 1 }
 0x9ad   : > { %v1423_v13 = vadd.f32 %v1422_v23, %v1421_v12 }
 0x9af   : > { %v1424_v19 = vadd.f32 %v1423_v13, %v2190_v46 }
 0x9b1   : > { %v1425_v21 = vmax.f32 %v1424_v19, 0.0 }
 0x9b3   : > { %v1426_v25 = vperm.slane %v1425_v21, 0 }
 0x9b5   : > { %v1429_v22 = vmul.f32 %v1426_v25, %v2201_v51  ;;  %v1428_v56 = vmul.f32 %v1426_v25, %v2217_v62  ;;  %v1427_v31 = vmul.f32 %v1426_v25, %v2206_v52  ;;  %v1430_v29 = vmul.f32 %v1426_v25, %v2196_v50  ;;  %v1811_v51 = vld [vmem:[%s2507_s2 + $0x50] sm:$0xff]  ;;  %v1812_v62 = vld [vmem:[%s2507_s2 + $0x58] sm:$0xff] }
 0x9b6   : > { %1698 = vmatmul.msk.bf16.gmra.mxu2 %vm389_vm1, %v1811_v51  ;;  %v1823_v52 = vld [vmem:[%s2507_s2 + $0xb0] sm:$0xff]  ;;  %v1824_v50 = vld [vmem:[%s2507_s2 + $0xb8] sm:$0xff] }
 0x9b7   : > { %v1437_v27 = vsel %vm777_vm2, %v1429_v22, 0.0  ;;  %v1434_v2 = vsel %vm777_vm2, %v1428_v56, 0.0  ;;  %v1431_v28 = vsel %vm777_vm2, %v1427_v31, 0.0  ;;  %v1440_v46 = vsel %vm777_vm2, %v1430_v29, 0.0  ;;  %1795 = vmatmul.msk.bf16.gmra.mxu1 %vm389_vm1, %v1823_v52 }
 0x9b8   : > { %1438 = vadd.xlane.f32.xlu0 %v1437_v27  ;;  %1435 = vadd.xlane.f32.xlu1 %v1434_v2 }
 0x9b9   : > { %1432 = vadd.xlane.f32.xlu2 %v1431_v28 }
 0x9c1   : > { %1441 = vadd.xlane.f32.xlu2 %v1440_v46 }
 0x9c6   : > { %1699 = vmatmul.msk.bf16.gmra.mxu2 %vm389_vm1, %v1812_v62 }
 0x9c7   : > { %1796 = vmatmul.msk.bf16.gmra.mxu1 %vm389_vm1, %v1824_v50 }
 0xa2b   : > { %v1439_v53 = vpop.xlane.xlu0 %1438  ;;  %v1436_v30 = vpop.xlane.xlu1 %1435 }
 0xa2c   : > { %v1445_v55 = vadd.f32 %v1439_v53, %v2229_v60  ;;  %v1444_v32 = vadd.f32 %v1436_v30, %v2242_v24  ;;  %v1433_v59 = vpop.xlane.xlu2 %1432 }
 0xa2d   : > { %v1443_v5 = vadd.f32 %v1433_v59, %v2234_v6 }
 0xa2e   : > { %v1449_v33 = vsub.f32 0.0, %v1445_v55  ;;  %v1448_v35 = vsub.f32 0.0, %v1444_v32 }
 0xa2f   : > { %v1447_v36 = vsub.f32 0.0, %v1443_v5 }
 0xa30   : > { %v1455_v37 = vmul.f32 1.442695, %v1449_v33  ;;  %v1453_v44 = vmul.f32 1.442695, %v1448_v35 }
 0xa31   : > { %v1451_v14 = vmul.f32 1.442695, %v1447_v36 }
 0xa32   : > { %1892 = vpow2.f32 %v1455_v37 }
 0xa33   : > { %1894 = vpow2.f32 %v1453_v44 }
 0xa34   : > { %1896 = vpow2.f32 %v1451_v14  ;;  %v1442_v39 = vpop.xlane.xlu2 %1441  ;;  %v1381_v5 = vpop.f32.mrf.mxu1 }
 0xa35   : > { %v1446_v45 = vadd.f32 %v1442_v39, %v2224_v4 }
 0xa37   : > { %v1450_v17 = vsub.f32 0.0, %v1446_v45 }
 0xa38   : > { %v1893_v41 = vpop.eup %1892 }
 0xa39   : > { %v1895_v60 = vpop.eup %1894  ;;  %v1461_v15 = vadd.f32 1.0, %v1893_v41  ;;  %v1457_v47 = vmul.f32 1.442695, %v1450_v17  ;;  %v743_v59 = vpop.f32.mrf.mxu2 }
 0xa3a   : > { %v1897_v24 = vpop.eup %1896  ;;  %v1460_v49 = vadd.f32 1.0, %v1895_v60 }
 0xa3b   : > { %1898 = vrcp.f32 %v1461_v15  ;;  %v1459_v6 = vadd.f32 1.0, %v1897_v24  ;;  %vm1498_vm1 = vweird.f32 %v1461_v15  ;;  %v1502_v4 = vand.u32 2147483647, %v1461_v15 }
 0xa3c   : > { %1900 = vrcp.f32 %v1460_v49  ;;  %v1487_v63 = vand.u32 2147483647, %v1460_v49  ;;  %v1504_v3 = vand.u32 2147483648, %v1461_v15  ;;  %v1489_v61 = vand.u32 2147483648, %v1460_v49  ;;  %v1382_v35 = vpop.f32.mrf.mxu1 }
 0xa3d   : > { %1902 = vrcp.f32 %v1459_v6  ;;  %v1474_v20 = vand.u32 2147483648, %v1459_v6  ;;  %v1472_v12 = vand.u32 2147483647, %v1459_v6  ;;  %vm1483_vm8 = vweird.f32 %v1460_v49 }
 0xa3e   : > { %1904 = vpow2.f32 %v1457_v47  ;;  %vm1503_vm10 = vcmp.eq.f32.partialorder %v1502_v4, 8.507059e+37  ;;  %v1505_v13 = vor.u32 1.1754944e-38, %v1504_v3  ;;  %v1490_v19 = vor.u32 1.1754944e-38, %v1489_v61 }
 0xa3f   : > { %vm1468_vm12 = vweird.f32 %v1459_v6  ;;  %vm1488_vm13 = vcmp.eq.f32.partialorder %v1487_v63, 8.507059e+37  ;;  %v1475_v31 = vor.u32 1.1754944e-38, %v1474_v20  ;;  %vm1473_vm15 = vcmp.eq.f32.partialorder %v1472_v12, 8.507059e+37 }
 0xa41   : > { %v1899_v18 = vpop.eup %1898  ;;  %v744_v33 = vpop.f32.mrf.mxu2 }
 0xa42   : > { %v1901_v54 = vpop.eup %1900  ;;  %v1494_v42 = vmul.f32 %v1899_v18, %v1461_v15  ;;  %vm1499_vm2 = vweird.f32 %v1899_v18 }
 0xa43   : > { %v1903_v9 = vpop.eup %1902  ;;  %v1479_v58 = vmul.f32 %v1901_v54, %v1460_v49  ;;  %vm1484_vm6 = vweird.f32 %v1901_v54  ;;  %vm1500_vm9 = vmor %vm1498_vm1, %vm1499_vm2 }
 0xa44   : > { %v1905_v0 = vpop.eup %1904  ;;  %v1495_v48 = vsub.f32 1.0, %v1494_v42  ;;  %v1464_v16 = vmul.f32 %v1903_v9, %v1459_v6  ;;  %vm1469_vm7 = vweird.f32 %v1903_v9  ;;  %vm1485_vm11 = vmor %vm1483_vm8, %vm1484_vm6  ;;  %v1384_v37 = vpop.f32.mrf.mxu1 }
 0xa45   : > { %v1462_v57 = vadd.f32 1.0, %v1905_v0  ;;  %v1480_v1 = vsub.f32 1.0, %v1479_v58  ;;  %vm1470_vm14 = vmor %vm1468_vm12, %vm1469_vm7 }
 0xa46   : > { %v1496_v8 = vmul.f32 %v1899_v18, %v1495_v48  ;;  %v1465_v7 = vsub.f32 1.0, %v1464_v16 }
 0xa47   : > { %1906 = vrcp.f32 %v1462_v57  ;;  %v1481_v10 = vmul.f32 %v1901_v54, %v1480_v1  ;;  %v1519_v52 = vand.u32 2147483648, %v1462_v57  ;;  %v1517_v50 = vand.u32 2147483647, %v1462_v57 }
 0xa48   : > { %v1497_v11 = vadd.f32 %v1899_v18, %v1496_v8  ;;  %v1466_v26 = vmul.f32 %v1903_v9, %v1465_v7  ;;  %vm1513_vm3 = vweird.f32 %v1462_v57 }
 0xa49   : > { %v1482_v23 = vadd.f32 %v1901_v54, %v1481_v10  ;;  %v1520_v30 = vor.u32 1.1754944e-38, %v1519_v52  ;;  %vm1518_vm5 = vcmp.eq.f32.partialorder %v1517_v50, 8.507059e+37  ;;  %v746_v36 = vpop.f32.mrf.mxu2 }
 0xa4a   : > { %v1501_v21 = vsel %vm1500_vm9, %v1899_v18, %v1497_v11  ;;  %v1467_v25 = vadd.f32 %v1903_v9, %v1466_v26 }
 0xa4b   : > { %v1486_v22 = vsel %vm1485_vm11, %v1901_v54, %v1482_v23  ;;  %v1506_v56 = vsel %vm1503_vm10, %v1505_v13, %v1501_v21 }
 0xa4c   : > { %v1491_v27 = vsel %vm1488_vm13, %v1490_v19, %v1486_v22  ;;  %1535 = vperm.xlu2 %1875, %v1506_v56   ;;  %v1471_v2 = vsel %vm1470_vm14, %v1903_v9, %v1467_v25  ;;  %v1385_v14 = vpop.f32.mrf.mxu1 }
 0xa4d   : > { %v1907_v28 = vpop.eup %1906  ;;  %1530 = vperm.xlu0 %1872, %v1491_v27   ;;  %v1476_v29 = vsel %vm1473_vm15, %v1475_v31, %v1471_v2 }
 0xa4e   : > { %1525 = vperm.xlu1 %1874, %v1476_v29   ;;  %v1509_v46 = vmul.f32 %v1907_v28, %v1462_v57  ;;  %vm1514_vm0 = vweird.f32 %v1907_v28 }
 0xa4f   : > { %vm1515_vm4 = vmor %vm1513_vm3, %vm1514_vm0 }
 0xa50   : > { %v1510_v51 = vsub.f32 1.0, %v1509_v46 }
 0xa51   : > { %v747_v44 = vpop.f32.mrf.mxu2 }
 0xa52   : > { %v1511_v62 = vmul.f32 %v1907_v28, %v1510_v51 }
 0xa54   : > { %v1512_v53 = vadd.f32 %v1907_v28, %v1511_v62 }
 0xa56   : > { %v1516_v55 = vsel %vm1515_vm4, %v1907_v28, %v1512_v53 }
 0xa57   : > { %v1521_v32 = vsel %vm1518_vm5, %v1520_v30, %v1516_v55 }
 0xa58   : > { %1540 = vperm.xlu0 %1872, %v1521_v32  }
 0xaa6   : > { %v1536_v39 = vpop.permute.xlu2 %1535 }
 0xaa7   : > { %v1545_v45 = vmul.f32 %v1536_v39, %v2445_v40 }
 0xaa9   : > { %1549 = vst [vmem:[%s278_s12 + $0x10] sm:$0xff] %v1545_v45 }
 0xabf   : > { %v1531_v17 = vpop.permute.xlu0 %1530 }
 0xac0   : > { %v1544_v41 = vmul.f32 %v1531_v17, %v2439_v38  ;;  %v1526_v60 = vpop.permute.xlu1 %1525 }
 0xac1   : > { %v1543_v15 = vmul.f32 %v1526_v60, %v2433_v34 }
 0xac2   : > { %1548 = vst [vmem:[%s278_s12 + $0x8] sm:$0xff] %v1544_v41 }
 0xac3   : > { %1547 = vst [vmem:[%s278_s12] sm:$0xff] %v1543_v15 }
 0xaca   : > { %v1541_v24 = vpop.permute.xlu0 %1540 }
 0xacb   : > { %v1546_v49 = vmul.f32 %v1541_v24, %v2451_v43 }
 0xacd   : > { %1550 = vst [vmem:[%s278_s12 + $0x18] sm:$0xff] %v1546_v49 }
 0xace PF: > { %s17_s24 = sadd.s32 1, %s1914_s24  }
 0xacf   : > { %p14_p4 = scmp.ge.s32.totalorder %s17_s24, 4  }
 0xad1   :  { %16 = sbr.rel (!%p14_p4) target bundleno = 1 (0x1), region = 88 }

</bundles_post_ra>
